<compile_context>
chip_gen: v6e
topology: v6e:2x2x1
jax: 0.10.0
libtpu: 0.0.40
codegen_flags: <defaults>
</compile_context>

<pallas_src>
import functools
import numpy as np
import jax
import jax.numpy as jnp
from jax import lax
from jax.experimental import pallas as pl
from jax.experimental.pallas import tpu as pltpu


# ----------------------------------------------------------------------------
# Fused head kernel: SPP -> neck(1x1) -> [1x1, 3x3, 1x1, 3x3] -> pred(1x1)
# ----------------------------------------------------------------------------
CPAD = 128                      # every channel dim padded to one full lane-vreg
SPP_KS = (5, 9, 13)             # SPP max-pool sizes (stride 1, 'same' padding)
MJ = max(SPP_KS) // 2           # max column (j) shift needed by SPP
NEG = -1e30                     # -inf stand-in for max-pool padding

# static indices into the stacked weight tensor (25, CPAD, CPAD):
#   4 neck blocks ([x, pool5, pool9, pool13]), cs0, 9 cs1 taps, cs2, 9 cs3 taps, pred
W_NECK, W_CS0, W_CS1, W_CS2, W_CS3, W_PRED = 0, 4, 5, 14, 15, 24
# static indices into the stacked bias tensor (6, CPAD)
B_NECK, B_CS0, B_CS1, B_CS2, B_CS3, B_PRED = 0, 1, 2, 3, 4, 5


def _yolo_head_kernel(x_ref, w_ref, b_ref, o_ref, xbuf, rowbuf, convbuf, *, H, W):
    """Entire head in one invocation; all activations stay in VMEM.

    Feature maps are kept flat as (H*W, CPAD) rows.  Spatial shifts (SPP pool
    windows, 3x3 conv taps) are static row-slices of over-allocated "canvas"
    scratch buffers whose margins hold the padding value (-inf for max-pool,
    0 for conv); intra-row wrap-around is removed with a per-row column mask.
    """
    HW = H * W
    MI = MJ * W                  # max row (i) shift (in flat rows), SPP
    MC = W + 1                   # max flat shift of a 3x3 tap
    f32 = jnp.float32

    x = x_ref[...]                                             # (HW, CPAD) f32

    # column index j of every flat row f = i*W + j (full shape -> no broadcasts)
    jcol = lax.broadcasted_iota(jnp.int32, (HW, CPAD), 0) % W

    def jmask(arr, dj, fill):
        # mask rows whose source column j+dj falls outside [0, W)
        if dj == 0:
            return arr
        m = (jcol < (W - dj)) if dj > 0 else (jcol >= (-dj))
        return jnp.where(m, arr, fill)

    def mm(a, widx):
        # bf16 MXU matmul with f32 accumulation (BN scale pre-folded into W)
        return jnp.dot(a.astype(jnp.bfloat16), w_ref[widx],
                       preferred_element_type=f32)

    def bias_act(acc, bidx, act=True):
        y = acc + b_ref[bidx:bidx + 1, :]
        return jnp.maximum(y, 0.1 * y) if act else y           # LeakyReLU(0.1)

    # ------------------- SPP + neck 1x1 --------------------------------------
    # neck weight is split into 4 (CPAD, CPAD) blocks so the 4x-channel concat
    # [x, pool5, pool9, pool13] is never materialized.
    xbuf[...] = jnp.full(xbuf.shape, NEG, f32)
    xbuf[MJ:MJ + HW, :] = x
    acc = mm(x, W_NECK)                                        # identity block
    for t, k in enumerate(SPP_KS):
        p = k // 2
        rmax = x                                               # horizontal max
        for dj in range(-p, p + 1):
            if dj == 0:
                continue
            rmax = jnp.maximum(
                rmax, jmask(xbuf[MJ + dj:MJ + dj + HW, :], dj, NEG))
        rowbuf[...] = jnp.full(rowbuf.shape, NEG, f32)
        rowbuf[MI:MI + HW, :] = rmax
        pooled = rmax                                          # vertical max
        for di in range(-p, p + 1):
            if di == 0:
                continue
            s = di * W
            pooled = jnp.maximum(pooled, rowbuf[MI + s:MI + s + HW, :])
        acc = acc + mm(pooled, W_NECK + 1 + t)
    act = bias_act(acc, B_NECK)

    # ------------------- convsets --------------------------------------------
    def conv3x3(a, wbase, bidx):
        convbuf[...] = jnp.zeros(convbuf.shape, f32)
        convbuf[MC:MC + HW, :] = a
        acc3 = None
        t = 0
        for di in (-1, 0, 1):                                  # tap order == HWIO
            for dj in (-1, 0, 1):
                s = di * W + dj
                tap = jmask(convbuf[MC + s:MC + s + HW, :], dj, 0.0)
                term = mm(tap, wbase + t)
                acc3 = term if acc3 is None else acc3 + term
                t += 1
        return bias_act(acc3, bidx)

    act = bias_act(mm(act, W_CS0), B_CS0)                      # Conv 1x1
    act = conv3x3(act, W_CS1, B_CS1)                           # Conv 3x3, p=1
    act = bias_act(mm(act, W_CS2), B_CS2)                      # Conv 1x1
    act = conv3x3(act, W_CS3, B_CS3)                           # Conv 3x3, p=1

    # ------------------- pred 1x1 (bias only, no BN / activation) ------------
    o_ref[...] = bias_act(mm(act, W_PRED), B_PRED, act=False)  # lane-dense store


def yolo_head_pallas(x_rows, wstack, bstack, H, W):
    """x_rows: (H*W, CPAD) f32 -> padded pred map (H*W, CPAD) f32."""
    HW = H * W
    kern = functools.partial(_yolo_head_kernel, H=H, W=W)
    # TODO(synk): at real YOLO scale (13x13, c5=512) add a 'parallel' M-tile grid
    # axis (pad HW 169->176) to shard across v7x's two TensorCores and set an
    # explicit vmem_limit_bytes; one invocation is already optimal at this size.
    return pl.pallas_call(
        kern,
        out_shape=jax.ShapeDtypeStruct((HW, CPAD), jnp.float32),
        grid=(1,),
        in_specs=[
            pl.BlockSpec((HW, CPAD), lambda i: (0, 0)),
            pl.BlockSpec(wstack.shape, lambda i: (0, 0, 0)),
            pl.BlockSpec(bstack.shape, lambda i: (0, 0)),
        ],
        out_specs=pl.BlockSpec((HW, CPAD), lambda i: (0, 0)),
        scratch_shapes=[
            pltpu.VMEM((HW + 2 * MJ, CPAD), jnp.float32),       # SPP j-shift canvas
            pltpu.VMEM((HW + 2 * MJ * W, CPAD), jnp.float32),   # SPP i-shift canvas
            pltpu.VMEM((HW + 2 * (W + 1), CPAD), jnp.float32),  # 3x3 tap canvas
        ],
        compiler_params=pltpu.CompilerParams(
            dimension_semantics=("arbitrary",)),
    )(x_rows, wstack, bstack)


# ----------------------------------------------------------------------------
# Parameter init (synthetic, deterministic) + padded/folded weight stacks
# ----------------------------------------------------------------------------
def init_conv_block(key, cin, cout, k):
    """Conv2d(k) + BatchNorm2d (eval) -> HWIO weight + folded scale/bias."""
    kw, kg, kb, km, kv = jax.random.split(key, 5)
    w = jax.random.normal(kw, (k, k, cin, cout), jnp.float32) * 0.05
    conv_b = jnp.zeros((cout,), jnp.float32)
    gamma = 1.0 + 0.1 * jax.random.normal(kg, (cout,), jnp.float32)
    beta = 0.1 * jax.random.normal(kb, (cout,), jnp.float32)
    mean = 0.1 * jax.random.normal(km, (cout,), jnp.float32)
    var = 1.0 + 0.1 * jax.random.uniform(kv, (cout,), jnp.float32)
    eps = 1e-5
    scale = gamma / jnp.sqrt(var + eps)
    bias = beta + (conv_b - mean) * scale
    return {"w": w, "scale": scale, "bias": bias}


def init_pred(key, cin, cout):
    kw, kb = jax.random.split(key)
    w = jax.random.normal(kw, (1, 1, cin, cout), jnp.float32) * 0.05
    b = 0.05 * jax.random.normal(kb, (cout,), jnp.float32)
    return {"w": w, "scale": jnp.ones((cout,), jnp.float32), "bias": b}


def _pad_mat(w2d, scale):
    """(cin, cout) weight, BN scale folded in, zero-padded to (CPAD, CPAD) bf16."""
    cin, cout = w2d.shape
    w2d = w2d * scale[None, :]
    m = jnp.zeros((CPAD, CPAD), jnp.float32).at[:cin, :cout].set(w2d)
    return m.astype(jnp.bfloat16)


def _pad_bias(b):
    return jnp.zeros((CPAD,), jnp.float32).at[:b.shape[0]].set(b)


def build_weight_stacks(params, c5):
    mats = []
    wn = params["neck"]["w"][0, 0]                             # (4*c5, c5)
    for t in range(4):                                         # [x, p5, p9, p13]
        mats.append(_pad_mat(wn[t * c5:(t + 1) * c5, :], params["neck"]["scale"]))
    mats.append(_pad_mat(params["cs0"]["w"][0, 0], params["cs0"]["scale"]))
    for u in range(3):
        for v in range(3):
            mats.append(_pad_mat(params["cs1"]["w"][u, v], params["cs1"]["scale"]))
    mats.append(_pad_mat(params["cs2"]["w"][0, 0], params["cs2"]["scale"]))
    for u in range(3):
        for v in range(3):
            mats.append(_pad_mat(params["cs3"]["w"][u, v], params["cs3"]["scale"]))
    mats.append(_pad_mat(params["pred"]["w"][0, 0], params["pred"]["scale"]))
    wstack = jnp.stack(mats)                                   # (25, CPAD, CPAD) bf16
    bstack = jnp.stack([_pad_bias(params[n]["bias"])
                        for n in ("neck", "cs0", "cs1", "cs2", "cs3", "pred")])
    return wstack, bstack                                      # (6, CPAD) f32


# ----------------------------------------------------------------------------
# MyYolo forward (inference branch)
# ----------------------------------------------------------------------------
def create_grid(input_size, stride):
    ws = hs = input_size // stride
    gy, gx = jnp.meshgrid(jnp.arange(hs), jnp.arange(ws), indexing="ij")
    grid_xy = jnp.stack([gx, gy], axis=-1).astype(jnp.float32)
    return grid_xy.reshape(1, hs * ws, 2)


def decode_boxes(pred, grid_cell, stride):
    xy = (jax.nn.sigmoid(pred[:, :, :2]) + grid_cell) * stride
    wh = jnp.exp(pred[:, :, 2:])
    return jnp.concatenate([xy - wh / 2.0, xy + wh / 2.0], axis=-1)


def myyolo_core(c5_nchw, wstack, bstack, *, input_size, num_classes=20, stride=32):
    """Returns (bboxes[HW,4], scores[HW,num_classes], pred[HW,25]) pre-NMS."""
    N, C, H, W = c5_nchw.shape
    assert N == 1, "fused head kernel implements the (batch-of-1) eval path"
    assert C <= CPAD
    HW = H * W

    x = jnp.transpose(c5_nchw, (0, 2, 3, 1)).reshape(HW, C).astype(jnp.float32)
    x = jnp.pad(x, ((0, 0), (0, CPAD - C)))                    # lane-dense input

    pred_pad = yolo_head_pallas(x, wstack, bstack, H, W)       # (HW, CPAD)
    pred = pred_pad[:, :1 + num_classes + 4][None]             # (1, HW, 25)

    conf_pred = pred[:, :, :1]
    cls_pred = pred[:, :, 1:1 + num_classes]
    txtytwth_pred = pred[:, :, 1 + num_classes:]

    grid_cell = create_grid(input_size, stride)
    conf = jax.nn.sigmoid(conf_pred)[0]                        # (HW, 1)
    bboxes = jnp.clip(
        (decode_boxes(txtytwth_pred, grid_cell, stride) / input_size)[0], 0.0, 1.0)
    scores = jax.nn.softmax(cls_pred[0], axis=1) * conf        # (HW, num_classes)
    return bboxes, scores, pred[0]


# ----------------------------------------------------------------------------
# Pure-JAX f32 reference of the head (for a runtime correctness check)
# ----------------------------------------------------------------------------
def head_reference(c5_nchw, params):
    x = jnp.transpose(c5_nchw, (0, 2, 3, 1)).astype(jnp.float32)

    def mp(v, k):
        p = k // 2
        return lax.reduce_window(v, -jnp.inf, lax.max, (1, k, k, 1), (1, 1, 1, 1),
                                 ((0, 0), (p, p), (p, p), (0, 0)))

    x = jnp.concatenate([x, mp(x, 5), mp(x, 9), mp(x, 13)], axis=-1)

    def cb(v, p, act=True):
        k = p["w"].shape[0]
        pad = k // 2
        y = lax.conv_general_dilated(v, p["w"], (1, 1), ((pad, pad), (pad, pad)),
                                     dimension_numbers=("NHWC", "HWIO", "NHWC"))
        y = y * p["scale"].reshape(1, 1, 1, -1) + p["bias"].reshape(1, 1, 1, -1)
        return jnp.where(y > 0, y, 0.1 * y) if act else y

    for name in ("neck", "cs0", "cs1", "cs2", "cs3"):
        x = cb(x, params[name])
    x = cb(x, params["pred"], act=False)
    return x.reshape(x.shape[0], x.shape[1] * x.shape[2], x.shape[3])


# ----------------------------------------------------------------------------
# Host-side postprocess / NMS (same numpy code as the torch module)
# ----------------------------------------------------------------------------
def nms(dets, scores, nms_thresh):
    x1, y1, x2, y2 = dets[:, 0], dets[:, 1], dets[:, 2], dets[:, 3]
    areas = (x2 - x1) * (y2 - y1)
    order = scores.argsort()[::-1]
    keep = []
    while order.size > 0:
        i = order[0]
        keep.append(i)
        xx1 = np.maximum(x1[i], x1[order[1:]])
        yy1 = np.maximum(y1[i], y1[order[1:]])
        xx2 = np.minimum(x2[i], x2[order[1:]])
        yy2 = np.minimum(y2[i], y2[order[1:]])
        w = np.maximum(1e-28, xx2 - xx1)
        h = np.maximum(1e-28, yy2 - yy1)
        inter = w * h
        ovr = inter / (areas[i] + areas[order[1:]] - inter)
        inds = np.where(ovr <= nms_thresh)[0]
        order = order[inds + 1]
    return keep


def postprocess(bboxes, scores, num_classes, conf_thresh, nms_thresh):
    cls_inds = np.argmax(scores, axis=1)
    scores = scores[np.arange(scores.shape[0]), cls_inds]
    keep = np.where(scores >= conf_thresh)
    bboxes, scores, cls_inds = bboxes[keep], scores[keep], cls_inds[keep]
    keep = np.zeros(len(bboxes), dtype=int)
    for i in range(num_classes):
        inds = np.where(cls_inds == i)[0]
        if len(inds) == 0:
            continue
        c_keep = nms(bboxes[inds], scores[inds], nms_thresh)
        keep[inds[c_keep]] = 1
    keep = np.where(keep > 0)
    return bboxes[keep], scores[keep], cls_inds[keep]


# ----------------------------------------------------------------------------
if __name__ == "__main__":
    key = jax.random.PRNGKey(0)
    input_size = 128
    stride = 32
    num_classes = 20
    conf_thresh = 0.01
    nms_thresh = 0.5
    c5 = 32                        # scaled-down stand-in for resnet18's 512 channels
    hs = ws = input_size // stride  # 4x4 feature map

    keys = jax.random.split(key, 8)
    params = {
        "neck": init_conv_block(keys[0], c5 * 4, c5, 1),
        "cs0":  init_conv_block(keys[1], c5, c5 // 2, 1),
        "cs1":  init_conv_block(keys[2], c5 // 2, c5, 3),
        "cs2":  init_conv_block(keys[3], c5, c5 // 2, 1),
        "cs3":  init_conv_block(keys[4], c5 // 2, c5, 3),
        "pred": init_pred(keys[5], c5, 1 + num_classes + 4),
    }
    wstack, bstack = build_weight_stacks(params, c5)

    # backbone (resnet18) output feature map, NCHW like the torch internals
    x = jax.random.normal(keys[6], (1, c5, hs, ws), jnp.float32)

    fwd = jax.jit(functools.partial(
        myyolo_core, input_size=input_size, num_classes=num_classes, stride=stride))
    bboxes_j, scores_j, pred_j = fwd(x, wstack, bstack)
    bboxes_j = jax.block_until_ready(bboxes_j)
    scores_j = jax.block_until_ready(scores_j)

    # correctness: fused bf16 Pallas head vs. plain f32 XLA reference
    pred_ref = head_reference(x, params)[0]
    assert np.allclose(np.asarray(pred_j), np.asarray(pred_ref),
                       rtol=3e-2, atol=3e-2), "fused head mismatch vs reference"

    bboxes, scores, cls_inds = postprocess(
        np.asarray(bboxes_j), np.asarray(scores_j),
        num_classes, conf_thresh, nms_thresh)
    assert bboxes.shape[1] == 4 and scores.shape == cls_inds.shape
    print("KERNEL_OK")
</pallas_src>

<mosaic_0001>
module attributes {stable_mosaic.version = 11 : i64} {
  func.func @_yolo_head_kernel(%arg0: i32, %arg1: memref<16x128xf32, #tpu.memory_space<vmem>>, %arg2: memref<25x128x128xbf16, #tpu.memory_space<vmem>>, %arg3: memref<6x128xf32, #tpu.memory_space<vmem>>, %arg4: memref<16x128xf32, #tpu.memory_space<vmem>>, %arg5: memref<28x128xf32, #tpu.memory_space<vmem>>, %arg6: memref<64x128xf32, #tpu.memory_space<vmem>>, %arg7: memref<26x128xf32, #tpu.memory_space<vmem>>) attributes {dimension_semantics = [#tpu.dimension_semantics<arbitrary>], iteration_bounds = array<i64: 1>, scalar_prefetch = 0 : i64, scratch_operands = 3 : i64, tpu.core_type = #tpu.core_type<tc>, window_params = [{pipeline_mode = #tpu.pipeline_mode<synchronous>, transform_indices = @transform_0, window_bounds = array<i64: 16, 128>}, {pipeline_mode = #tpu.pipeline_mode<synchronous>, transform_indices = @transform_1, window_bounds = array<i64: 25, 128, 128>}, {pipeline_mode = #tpu.pipeline_mode<synchronous>, transform_indices = @transform_2, window_bounds = array<i64: 6, 128>}, {pipeline_mode = #tpu.pipeline_mode<synchronous>, transform_indices = @transform_3, window_bounds = array<i64: 16, 128>}]} {
    %c0 = arith.constant 0 : index
    %c0_0 = arith.constant 0 : index
    %0 = vector.load %arg1[%c0, %c0_0] : memref<16x128xf32, #tpu.memory_space<vmem>>, vector<16x128xf32>
    %1 = tpu.iota {dimensions = array<i32: 0>} : vector<16x128xi32>
    %c4_i32 = arith.constant 4 : i32
    %c0_i32 = arith.constant 0 : i32
    %2 = arith.cmpi eq, %c4_i32, %c0_i32 : i32
    %c1_i32 = arith.constant 1 : i32
    %3 = arith.select %2, %c1_i32, %c4_i32 : i32
    %4 = vector.broadcast %3 : i32 to vector<16x128xi32>
    %5 = arith.remsi %1, %4 : vector<16x128xi32>
    %c0_i32_1 = arith.constant 0 : i32
    %6 = vector.broadcast %c0_i32_1 : i32 to vector<16x128xi32>
    %7 = arith.cmpi ne, %5, %6 : vector<16x128xi32>
    %c0_i32_2 = arith.constant 0 : i32
    %8 = vector.broadcast %c0_i32_2 : i32 to vector<16x128xi32>
    %9 = arith.cmpi slt, %5, %8 : vector<16x128xi32>
    %c0_i32_3 = arith.constant 0 : i32
    %10 = arith.cmpi slt, %3, %c0_i32_3 : i32
    %11 = vector.broadcast %10 : i1 to vector<16x128xi1>
    %12 = vector.broadcast %11 : vector<16x128xi1> to vector<16x128xi1>
    %13 = arith.xori %9, %12 : vector<16x128xi1>
    %14 = arith.andi %13, %7 : vector<16x128xi1>
    %15 = vector.broadcast %3 : i32 to vector<16x128xi32>
    %16 = arith.addi %5, %15 : vector<16x128xi32>
    %17 = arith.select %14, %16, %5 : vector<16x128xi1>, vector<16x128xi32>
    %cst = arith.constant -1.000000e+30 : f32
    %18 = vector.broadcast %cst : f32 to vector<28x128xf32>
    %c0_4 = arith.constant 0 : index
    %c0_5 = arith.constant 0 : index
    %19 = vector.load %arg5[%c0_4, %c0_5] : memref<28x128xf32, #tpu.memory_space<vmem>>, vector<28x128xf32>
    tpu.vector_store %arg5[%c0_4, %c0_5], %18 {strides = array<i32>} : memref<28x128xf32, #tpu.memory_space<vmem>>, vector<28x128xf32>,
    %c6 = arith.constant 6 : index
    %c0_6 = arith.constant 0 : index
    %20 = vector.load %arg5[%c6, %c0_6] : memref<28x128xf32, #tpu.memory_space<vmem>>, vector<16x128xf32>
    tpu.vector_store %arg5[%c6, %c0_6], %0 {strides = array<i32>} : memref<28x128xf32, #tpu.memory_space<vmem>>, vector<16x128xf32>,
    %21 = arith.truncf %0 : vector<16x128xf32> to vector<16x128xbf16>
    %c0_7 = arith.constant 0 : index
    %c0_8 = arith.constant 0 : index
    %c0_9 = arith.constant 0 : index
    %22 = vector.load %arg2[%c0_7, %c0_8, %c0_9] : memref<25x128x128xbf16, #tpu.memory_space<vmem>>, vector<1x128x128xbf16>
    %23 = vector.shape_cast %22 : vector<1x128x128xbf16> to vector<128x128xbf16>
    %cst_10 = arith.constant dense<0.000000e+00> : vector<16x128xf32>
    %24 = tpu.matmul %21, %23, %cst_10 {dimension_numbers = #tpu.dot_dimension_numbers<[1], [0], [0], [1], [0, 0, 1, 1], [], []>} : vector<16x128xbf16>, vector<128x128xbf16>, vector<16x128xf32> -> vector<16x128xf32>
    %c4 = arith.constant 4 : index
    %c0_11 = arith.constant 0 : index
    %25 = vector.load %arg5[%c4, %c0_11] : memref<28x128xf32, #tpu.memory_space<vmem>>, vector<16x128xf32>
    %c2_i32 = arith.constant 2 : i32
    %26 = vector.broadcast %c2_i32 : i32 to vector<16x128xi32>
    %27 = arith.cmpi sge, %17, %26 : vector<16x128xi32>
    %cst_12 = arith.constant -1.000000e+30 : f32
    %28 = vector.broadcast %cst_12 : f32 to vector<16x128xf32>
    %29 = arith.select %27, %25, %28 : vector<16x128xi1>, vector<16x128xf32>
    %30 = arith.maximumf %0, %29 : vector<16x128xf32>
    %c5 = arith.constant 5 : index
    %c0_13 = arith.constant 0 : index
    %31 = vector.load %arg5[%c5, %c0_13] : memref<28x128xf32, #tpu.memory_space<vmem>>, vector<16x128xf32>
    %c1_i32_14 = arith.constant 1 : i32
    %32 = vector.broadcast %c1_i32_14 : i32 to vector<16x128xi32>
    %33 = arith.cmpi sge, %17, %32 : vector<16x128xi32>
    %cst_15 = arith.constant -1.000000e+30 : f32
    %34 = vector.broadcast %cst_15 : f32 to vector<16x128xf32>
    %35 = arith.select %33, %31, %34 : vector<16x128xi1>, vector<16x128xf32>
    %36 = arith.maximumf %30, %35 : vector<16x128xf32>
    %c7 = arith.constant 7 : index
    %c0_16 = arith.constant 0 : index
    %37 = vector.load %arg5[%c7, %c0_16] : memref<28x128xf32, #tpu.memory_space<vmem>>, vector<16x128xf32>
    %c3_i32 = arith.constant 3 : i32
    %38 = vector.broadcast %c3_i32 : i32 to vector<16x128xi32>
    %39 = arith.cmpi slt, %17, %38 : vector<16x128xi32>
    %cst_17 = arith.constant -1.000000e+30 : f32
    %40 = vector.broadcast %cst_17 : f32 to vector<16x128xf32>
    %41 = arith.select %39, %37, %40 : vector<16x128xi1>, vector<16x128xf32>
    %42 = arith.maximumf %36, %41 : vector<16x128xf32>
    %c8 = arith.constant 8 : index
    %c0_18 = arith.constant 0 : index
    %43 = vector.load %arg5[%c8, %c0_18] : memref<28x128xf32, #tpu.memory_space<vmem>>, vector<16x128xf32>
    %c2_i32_19 = arith.constant 2 : i32
    %44 = vector.broadcast %c2_i32_19 : i32 to vector<16x128xi32>
    %45 = arith.cmpi slt, %17, %44 : vector<16x128xi32>
    %cst_20 = arith.constant -1.000000e+30 : f32
    %46 = vector.broadcast %cst_20 : f32 to vector<16x128xf32>
    %47 = arith.select %45, %43, %46 : vector<16x128xi1>, vector<16x128xf32>
    %48 = arith.maximumf %42, %47 : vector<16x128xf32>
    %cst_21 = arith.constant -1.000000e+30 : f32
    %49 = vector.broadcast %cst_21 : f32 to vector<64x128xf32>
    %c0_22 = arith.constant 0 : index
    %c0_23 = arith.constant 0 : index
    %50 = vector.load %arg6[%c0_22, %c0_23] : memref<64x128xf32, #tpu.memory_space<vmem>>, vector<64x128xf32>
    tpu.vector_store %arg6[%c0_22, %c0_23], %49 {strides = array<i32>} : memref<64x128xf32, #tpu.memory_space<vmem>>, vector<64x128xf32>,
    %c24 = arith.constant 24 : index
    %c0_24 = arith.constant 0 : index
    %51 = vector.load %arg6[%c24, %c0_24] : memref<64x128xf32, #tpu.memory_space<vmem>>, vector<16x128xf32>
    tpu.vector_store %arg6[%c24, %c0_24], %48 {strides = array<i32>} : memref<64x128xf32, #tpu.memory_space<vmem>>, vector<16x128xf32>,
    %c16 = arith.constant 16 : index
    %c0_25 = arith.constant 0 : index
    %52 = vector.load %arg6[%c16, %c0_25] : memref<64x128xf32, #tpu.memory_space<vmem>>, vector<16x128xf32>
    %53 = arith.maximumf %48, %52 : vector<16x128xf32>
    %c20 = arith.constant 20 : index
    %c0_26 = arith.constant 0 : index
    %54 = vector.load %arg6[%c20, %c0_26] : memref<64x128xf32, #tpu.memory_space<vmem>>, vector<16x128xf32>
    %55 = arith.maximumf %53, %54 : vector<16x128xf32>
    %c28 = arith.constant 28 : index
    %c0_27 = arith.constant 0 : index
    %56 = vector.load %arg6[%c28, %c0_27] : memref<64x128xf32, #tpu.memory_space<vmem>>, vector<16x128xf32>
    %57 = arith.maximumf %55, %56 : vector<16x128xf32>
    %c32 = arith.constant 32 : index
    %c0_28 = arith.constant 0 : index
    %58 = vector.load %arg6[%c32, %c0_28] : memref<64x128xf32, #tpu.memory_space<vmem>>, vector<16x128xf32>
    %59 = arith.maximumf %57, %58 : vector<16x128xf32>
    %60 = arith.truncf %59 : vector<16x128xf32> to vector<16x128xbf16>
    %c1 = arith.constant 1 : index
    %c0_29 = arith.constant 0 : index
    %c0_30 = arith.constant 0 : index
    %61 = vector.load %arg2[%c1, %c0_29, %c0_30] : memref<25x128x128xbf16, #tpu.memory_space<vmem>>, vector<1x128x128xbf16>
    %62 = vector.shape_cast %61 : vector<1x128x128xbf16> to vector<128x128xbf16>
    %cst_31 = arith.constant dense<0.000000e+00> : vector<16x128xf32>
    %63 = tpu.matmul %60, %62, %cst_31 {dimension_numbers = #tpu.dot_dimension_numbers<[1], [0], [0], [1], [0, 0, 1, 1], [], []>} : vector<16x128xbf16>, vector<128x128xbf16>, vector<16x128xf32> -> vector<16x128xf32>
    %64 = arith.addf %24, %63 : vector<16x128xf32>
    %c2 = arith.constant 2 : index
    %c0_32 = arith.constant 0 : index
    %65 = vector.load %arg5[%c2, %c0_32] : memref<28x128xf32, #tpu.memory_space<vmem>>, vector<16x128xf32>
    %c4_i32_33 = arith.constant 4 : i32
    %66 = vector.broadcast %c4_i32_33 : i32 to vector<16x128xi32>
    %67 = arith.cmpi sge, %17, %66 : vector<16x128xi32>
    %cst_34 = arith.constant -1.000000e+30 : f32
    %68 = vector.broadcast %cst_34 : f32 to vector<16x128xf32>
    %69 = arith.select %67, %65, %68 : vector<16x128xi1>, vector<16x128xf32>
    %70 = arith.maximumf %0, %69 : vector<16x128xf32>
    %c3 = arith.constant 3 : index
    %c0_35 = arith.constant 0 : index
    %71 = vector.load %arg5[%c3, %c0_35] : memref<28x128xf32, #tpu.memory_space<vmem>>, vector<16x128xf32>
    %c3_i32_36 = arith.constant 3 : i32
    %72 = vector.broadcast %c3_i32_36 : i32 to vector<16x128xi32>
    %73 = arith.cmpi sge, %17, %72 : vector<16x128xi32>
    %cst_37 = arith.constant -1.000000e+30 : f32
    %74 = vector.broadcast %cst_37 : f32 to vector<16x128xf32>
    %75 = arith.select %73, %71, %74 : vector<16x128xi1>, vector<16x128xf32>
    %76 = arith.maximumf %70, %75 : vector<16x128xf32>
    %c4_38 = arith.constant 4 : index
    %c0_39 = arith.constant 0 : index
    %77 = vector.load %arg5[%c4_38, %c0_39] : memref<28x128xf32, #tpu.memory_space<vmem>>, vector<16x128xf32>
    %c2_i32_40 = arith.constant 2 : i32
    %78 = vector.broadcast %c2_i32_40 : i32 to vector<16x128xi32>
    %79 = arith.cmpi sge, %17, %78 : vector<16x128xi32>
    %cst_41 = arith.constant -1.000000e+30 : f32
    %80 = vector.broadcast %cst_41 : f32 to vector<16x128xf32>
    %81 = arith.select %79, %77, %80 : vector<16x128xi1>, vector<16x128xf32>
    %82 = arith.maximumf %76, %81 : vector<16x128xf32>
    %c5_42 = arith.constant 5 : index
    %c0_43 = arith.constant 0 : index
    %83 = vector.load %arg5[%c5_42, %c0_43] : memref<28x128xf32, #tpu.memory_space<vmem>>, vector<16x128xf32>
    %c1_i32_44 = arith.constant 1 : i32
    %84 = vector.broadcast %c1_i32_44 : i32 to vector<16x128xi32>
    %85 = arith.cmpi sge, %17, %84 : vector<16x128xi32>
    %cst_45 = arith.constant -1.000000e+30 : f32
    %86 = vector.broadcast %cst_45 : f32 to vector<16x128xf32>
    %87 = arith.select %85, %83, %86 : vector<16x128xi1>, vector<16x128xf32>
    %88 = arith.maximumf %82, %87 : vector<16x128xf32>
    %c7_46 = arith.constant 7 : index
    %c0_47 = arith.constant 0 : index
    %89 = vector.load %arg5[%c7_46, %c0_47] : memref<28x128xf32, #tpu.memory_space<vmem>>, vector<16x128xf32>
    %c3_i32_48 = arith.constant 3 : i32
    %90 = vector.broadcast %c3_i32_48 : i32 to vector<16x128xi32>
    %91 = arith.cmpi slt, %17, %90 : vector<16x128xi32>
    %cst_49 = arith.constant -1.000000e+30 : f32
    %92 = vector.broadcast %cst_49 : f32 to vector<16x128xf32>
    %93 = arith.select %91, %89, %92 : vector<16x128xi1>, vector<16x128xf32>
    %94 = arith.maximumf %88, %93 : vector<16x128xf32>
    %c8_50 = arith.constant 8 : index
    %c0_51 = arith.constant 0 : index
    %95 = vector.load %arg5[%c8_50, %c0_51] : memref<28x128xf32, #tpu.memory_space<vmem>>, vector<16x128xf32>
    %c2_i32_52 = arith.constant 2 : i32
    %96 = vector.broadcast %c2_i32_52 : i32 to vector<16x128xi32>
    %97 = arith.cmpi slt, %17, %96 : vector<16x128xi32>
    %cst_53 = arith.constant -1.000000e+30 : f32
    %98 = vector.broadcast %cst_53 : f32 to vector<16x128xf32>
    %99 = arith.select %97, %95, %98 : vector<16x128xi1>, vector<16x128xf32>
    %100 = arith.maximumf %94, %99 : vector<16x128xf32>
    %c9 = arith.constant 9 : index
    %c0_54 = arith.constant 0 : index
    %101 = vector.load %arg5[%c9, %c0_54] : memref<28x128xf32, #tpu.memory_space<vmem>>, vector<16x128xf32>
    %c1_i32_55 = arith.constant 1 : i32
    %102 = vector.broadcast %c1_i32_55 : i32 to vector<16x128xi32>
    %103 = arith.cmpi slt, %17, %102 : vector<16x128xi32>
    %cst_56 = arith.constant -1.000000e+30 : f32
    %104 = vector.broadcast %cst_56 : f32 to vector<16x128xf32>
    %105 = arith.select %103, %101, %104 : vector<16x128xi1>, vector<16x128xf32>
    %106 = arith.maximumf %100, %105 : vector<16x128xf32>
    %c10 = arith.constant 10 : index
    %c0_57 = arith.constant 0 : index
    %107 = vector.load %arg5[%c10, %c0_57] : memref<28x128xf32, #tpu.memory_space<vmem>>, vector<16x128xf32>
    %c0_i32_58 = arith.constant 0 : i32
    %108 = vector.broadcast %c0_i32_58 : i32 to vector<16x128xi32>
    %109 = arith.cmpi slt, %17, %108 : vector<16x128xi32>
    %cst_59 = arith.constant -1.000000e+30 : f32
    %110 = vector.broadcast %cst_59 : f32 to vector<16x128xf32>
    %111 = arith.select %109, %107, %110 : vector<16x128xi1>, vector<16x128xf32>
    %112 = arith.maximumf %106, %111 : vector<16x128xf32>
    %cst_60 = arith.constant -1.000000e+30 : f32
    %113 = vector.broadcast %cst_60 : f32 to vector<64x128xf32>
    %c0_61 = arith.constant 0 : index
    %c0_62 = arith.constant 0 : index
    %114 = vector.load %arg6[%c0_61, %c0_62] : memref<64x128xf32, #tpu.memory_space<vmem>>, vector<64x128xf32>
    tpu.vector_store %arg6[%c0_61, %c0_62], %113 {strides = array<i32>} : memref<64x128xf32, #tpu.memory_space<vmem>>, vector<64x128xf32>,
    %c24_63 = arith.constant 24 : index
    %c0_64 = arith.constant 0 : index
    %115 = vector.load %arg6[%c24_63, %c0_64] : memref<64x128xf32, #tpu.memory_space<vmem>>, vector<16x128xf32>
    tpu.vector_store %arg6[%c24_63, %c0_64], %112 {strides = array<i32>} : memref<64x128xf32, #tpu.memory_space<vmem>>, vector<16x128xf32>,
    %c8_65 = arith.constant 8 : index
    %c0_66 = arith.constant 0 : index
    %116 = vector.load %arg6[%c8_65, %c0_66] : memref<64x128xf32, #tpu.memory_space<vmem>>, vector<16x128xf32>
    %117 = arith.maximumf %112, %116 : vector<16x128xf32>
    %c12 = arith.constant 12 : index
    %c0_67 = arith.constant 0 : index
    %118 = vector.load %arg6[%c12, %c0_67] : memref<64x128xf32, #tpu.memory_space<vmem>>, vector<16x128xf32>
    %119 = arith.maximumf %117, %118 : vector<16x128xf32>
    %c16_68 = arith.constant 16 : index
    %c0_69 = arith.constant 0 : index
    %120 = vector.load %arg6[%c16_68, %c0_69] : memref<64x128xf32, #tpu.memory_space<vmem>>, vector<16x128xf32>
    %121 = arith.maximumf %119, %120 : vector<16x128xf32>
    %c20_70 = arith.constant 20 : index
    %c0_71 = arith.constant 0 : index
    %122 = vector.load %arg6[%c20_70, %c0_71] : memref<64x128xf32, #tpu.memory_space<vmem>>, vector<16x128xf32>
    %123 = arith.maximumf %121, %122 : vector<16x128xf32>
    %c28_72 = arith.constant 28 : index
    %c0_73 = arith.constant 0 : index
    %124 = vector.load %arg6[%c28_72, %c0_73] : memref<64x128xf32, #tpu.memory_space<vmem>>, vector<16x128xf32>
    %125 = arith.maximumf %123, %124 : vector<16x128xf32>
    %c32_74 = arith.constant 32 : index
    %c0_75 = arith.constant 0 : index
    %126 = vector.load %arg6[%c32_74, %c0_75] : memref<64x128xf32, #tpu.memory_space<vmem>>, vector<16x128xf32>
    %127 = arith.maximumf %125, %126 : vector<16x128xf32>
    %c36 = arith.constant 36 : index
    %c0_76 = arith.constant 0 : index
    %128 = vector.load %arg6[%c36, %c0_76] : memref<64x128xf32, #tpu.memory_space<vmem>>, vector<16x128xf32>
    %129 = arith.maximumf %127, %128 : vector<16x128xf32>
    %c40 = arith.constant 40 : index
    %c0_77 = arith.constant 0 : index
    %130 = vector.load %arg6[%c40, %c0_77] : memref<64x128xf32, #tpu.memory_space<vmem>>, vector<16x128xf32>
    %131 = arith.maximumf %129, %130 : vector<16x128xf32>
    %132 = arith.truncf %131 : vector<16x128xf32> to vector<16x128xbf16>
    %c2_78 = arith.constant 2 : index
    %c0_79 = arith.constant 0 : index
    %c0_80 = arith.constant 0 : index
    %133 = vector.load %arg2[%c2_78, %c0_79, %c0_80] : memref<25x128x128xbf16, #tpu.memory_space<vmem>>, vector<1x128x128xbf16>
    %134 = vector.shape_cast %133 : vector<1x128x128xbf16> to vector<128x128xbf16>
    %cst_81 = arith.constant dense<0.000000e+00> : vector<16x128xf32>
    %135 = tpu.matmul %132, %134, %cst_81 {dimension_numbers = #tpu.dot_dimension_numbers<[1], [0], [0], [1], [0, 0, 1, 1], [], []>} : vector<16x128xbf16>, vector<128x128xbf16>, vector<16x128xf32> -> vector<16x128xf32>
    %136 = arith.addf %64, %135 : vector<16x128xf32>
    %c0_82 = arith.constant 0 : index
    %c0_83 = arith.constant 0 : index
    %137 = vector.load %arg5[%c0_82, %c0_83] : memref<28x128xf32, #tpu.memory_space<vmem>>, vector<16x128xf32>
    %c6_i32 = arith.constant 6 : i32
    %138 = vector.broadcast %c6_i32 : i32 to vector<16x128xi32>
    %139 = arith.cmpi sge, %17, %138 : vector<16x128xi32>
    %cst_84 = arith.constant -1.000000e+30 : f32
    %140 = vector.broadcast %cst_84 : f32 to vector<16x128xf32>
    %141 = arith.select %139, %137, %140 : vector<16x128xi1>, vector<16x128xf32>
    %142 = arith.maximumf %0, %141 : vector<16x128xf32>
    %c1_85 = arith.constant 1 : index
    %c0_86 = arith.constant 0 : index
    %143 = vector.load %arg5[%c1_85, %c0_86] : memref<28x128xf32, #tpu.memory_space<vmem>>, vector<16x128xf32>
    %c5_i32 = arith.constant 5 : i32
    %144 = vector.broadcast %c5_i32 : i32 to vector<16x128xi32>
    %145 = arith.cmpi sge, %17, %144 : vector<16x128xi32>
    %cst_87 = arith.constant -1.000000e+30 : f32
    %146 = vector.broadcast %cst_87 : f32 to vector<16x128xf32>
    %147 = arith.select %145, %143, %146 : vector<16x128xi1>, vector<16x128xf32>
    %148 = arith.maximumf %142, %147 : vector<16x128xf32>
    %c2_88 = arith.constant 2 : index
    %c0_89 = arith.constant 0 : index
    %149 = vector.load %arg5[%c2_88, %c0_89] : memref<28x128xf32, #tpu.memory_space<vmem>>, vector<16x128xf32>
    %c4_i32_90 = arith.constant 4 : i32
    %150 = vector.broadcast %c4_i32_90 : i32 to vector<16x128xi32>
    %151 = arith.cmpi sge, %17, %150 : vector<16x128xi32>
    %cst_91 = arith.constant -1.000000e+30 : f32
    %152 = vector.broadcast %cst_91 : f32 to vector<16x128xf32>
    %153 = arith.select %151, %149, %152 : vector<16x128xi1>, vector<16x128xf32>
    %154 = arith.maximumf %148, %153 : vector<16x128xf32>
    %c3_92 = arith.constant 3 : index
    %c0_93 = arith.constant 0 : index
    %155 = vector.load %arg5[%c3_92, %c0_93] : memref<28x128xf32, #tpu.memory_space<vmem>>, vector<16x128xf32>
    %c3_i32_94 = arith.constant 3 : i32
    %156 = vector.broadcast %c3_i32_94 : i32 to vector<16x128xi32>
    %157 = arith.cmpi sge, %17, %156 : vector<16x128xi32>
    %cst_95 = arith.constant -1.000000e+30 : f32
    %158 = vector.broadcast %cst_95 : f32 to vector<16x128xf32>
    %159 = arith.select %157, %155, %158 : vector<16x128xi1>, vector<16x128xf32>
    %160 = arith.maximumf %154, %159 : vector<16x128xf32>
    %c4_96 = arith.constant 4 : index
    %c0_97 = arith.constant 0 : index
    %161 = vector.load %arg5[%c4_96, %c0_97] : memref<28x128xf32, #tpu.memory_space<vmem>>, vector<16x128xf32>
    %c2_i32_98 = arith.constant 2 : i32
    %162 = vector.broadcast %c2_i32_98 : i32 to vector<16x128xi32>
    %163 = arith.cmpi sge, %17, %162 : vector<16x128xi32>
    %cst_99 = arith.constant -1.000000e+30 : f32
    %164 = vector.broadcast %cst_99 : f32 to vector<16x128xf32>
    %165 = arith.select %163, %161, %164 : vector<16x128xi1>, vector<16x128xf32>
    %166 = arith.maximumf %160, %165 : vector<16x128xf32>
    %c5_100 = arith.constant 5 : index
    %c0_101 = arith.constant 0 : index
    %167 = vector.load %arg5[%c5_100, %c0_101] : memref<28x128xf32, #tpu.memory_space<vmem>>, vector<16x128xf32>
    %c1_i32_102 = arith.constant 1 : i32
    %168 = vector.broadcast %c1_i32_102 : i32 to vector<16x128xi32>
    %169 = arith.cmpi sge, %17, %168 : vector<16x128xi32>
    %cst_103 = arith.constant -1.000000e+30 : f32
    %170 = vector.broadcast %cst_103 : f32 to vector<16x128xf32>
    %171 = arith.select %169, %167, %170 : vector<16x128xi1>, vector<16x128xf32>
    %172 = arith.maximumf %166, %171 : vector<16x128xf32>
    %c7_104 = arith.constant 7 : index
    %c0_105 = arith.constant 0 : index
    %173 = vector.load %arg5[%c7_104, %c0_105] : memref<28x128xf32, #tpu.memory_space<vmem>>, vector<16x128xf32>
    %c3_i32_106 = arith.constant 3 : i32
    %174 = vector.broadcast %c3_i32_106 : i32 to vector<16x128xi32>
    %175 = arith.cmpi slt, %17, %174 : vector<16x128xi32>
    %cst_107 = arith.constant -1.000000e+30 : f32
    %176 = vector.broadcast %cst_107 : f32 to vector<16x128xf32>
    %177 = arith.select %175, %173, %176 : vector<16x128xi1>, vector<16x128xf32>
    %178 = arith.maximumf %172, %177 : vector<16x128xf32>
    %c8_108 = arith.constant 8 : index
    %c0_109 = arith.constant 0 : index
    %179 = vector.load %arg5[%c8_108, %c0_109] : memref<28x128xf32, #tpu.memory_space<vmem>>, vector<16x128xf32>
    %c2_i32_110 = arith.constant 2 : i32
    %180 = vector.broadcast %c2_i32_110 : i32 to vector<16x128xi32>
    %181 = arith.cmpi slt, %17, %180 : vector<16x128xi32>
    %cst_111 = arith.constant -1.000000e+30 : f32
    %182 = vector.broadcast %cst_111 : f32 to vector<16x128xf32>
    %183 = arith.select %181, %179, %182 : vector<16x128xi1>, vector<16x128xf32>
    %184 = arith.maximumf %178, %183 : vector<16x128xf32>
    %c9_112 = arith.constant 9 : index
    %c0_113 = arith.constant 0 : index
    %185 = vector.load %arg5[%c9_112, %c0_113] : memref<28x128xf32, #tpu.memory_space<vmem>>, vector<16x128xf32>
    %c1_i32_114 = arith.constant 1 : i32
    %186 = vector.broadcast %c1_i32_114 : i32 to vector<16x128xi32>
    %187 = arith.cmpi slt, %17, %186 : vector<16x128xi32>
    %cst_115 = arith.constant -1.000000e+30 : f32
    %188 = vector.broadcast %cst_115 : f32 to vector<16x128xf32>
    %189 = arith.select %187, %185, %188 : vector<16x128xi1>, vector<16x128xf32>
    %190 = arith.maximumf %184, %189 : vector<16x128xf32>
    %c10_116 = arith.constant 10 : index
    %c0_117 = arith.constant 0 : index
    %191 = vector.load %arg5[%c10_116, %c0_117] : memref<28x128xf32, #tpu.memory_space<vmem>>, vector<16x128xf32>
    %c0_i32_118 = arith.constant 0 : i32
    %192 = vector.broadcast %c0_i32_118 : i32 to vector<16x128xi32>
    %193 = arith.cmpi slt, %17, %192 : vector<16x128xi32>
    %cst_119 = arith.constant -1.000000e+30 : f32
    %194 = vector.broadcast %cst_119 : f32 to vector<16x128xf32>
    %195 = arith.select %193, %191, %194 : vector<16x128xi1>, vector<16x128xf32>
    %196 = arith.maximumf %190, %195 : vector<16x128xf32>
    %c11 = arith.constant 11 : index
    %c0_120 = arith.constant 0 : index
    %197 = vector.load %arg5[%c11, %c0_120] : memref<28x128xf32, #tpu.memory_space<vmem>>, vector<16x128xf32>
    %c-1_i32 = arith.constant -1 : i32
    %198 = vector.broadcast %c-1_i32 : i32 to vector<16x128xi32>
    %199 = arith.cmpi slt, %17, %198 : vector<16x128xi32>
    %cst_121 = arith.constant -1.000000e+30 : f32
    %200 = vector.broadcast %cst_121 : f32 to vector<16x128xf32>
    %201 = arith.select %199, %197, %200 : vector<16x128xi1>, vector<16x128xf32>
    %202 = arith.maximumf %196, %201 : vector<16x128xf32>
    %c12_122 = arith.constant 12 : index
    %c0_123 = arith.constant 0 : index
    %203 = vector.load %arg5[%c12_122, %c0_123] : memref<28x128xf32, #tpu.memory_space<vmem>>, vector<16x128xf32>
    %c-2_i32 = arith.constant -2 : i32
    %204 = vector.broadcast %c-2_i32 : i32 to vector<16x128xi32>
    %205 = arith.cmpi slt, %17, %204 : vector<16x128xi32>
    %cst_124 = arith.constant -1.000000e+30 : f32
    %206 = vector.broadcast %cst_124 : f32 to vector<16x128xf32>
    %207 = arith.select %205, %203, %206 : vector<16x128xi1>, vector<16x128xf32>
    %208 = arith.maximumf %202, %207 : vector<16x128xf32>
    %cst_125 = arith.constant -1.000000e+30 : f32
    %209 = vector.broadcast %cst_125 : f32 to vector<64x128xf32>
    %c0_126 = arith.constant 0 : index
    %c0_127 = arith.constant 0 : index
    %210 = vector.load %arg6[%c0_126, %c0_127] : memref<64x128xf32, #tpu.memory_space<vmem>>, vector<64x128xf32>
    tpu.vector_store %arg6[%c0_126, %c0_127], %209 {strides = array<i32>} : memref<64x128xf32, #tpu.memory_space<vmem>>, vector<64x128xf32>,
    %c24_128 = arith.constant 24 : index
    %c0_129 = arith.constant 0 : index
    %211 = vector.load %arg6[%c24_128, %c0_129] : memref<64x128xf32, #tpu.memory_space<vmem>>, vector<16x128xf32>
    tpu.vector_store %arg6[%c24_128, %c0_129], %208 {strides = array<i32>} : memref<64x128xf32, #tpu.memory_space<vmem>>, vector<16x128xf32>,
    %c0_130 = arith.constant 0 : index
    %c0_131 = arith.constant 0 : index
    %212 = vector.load %arg6[%c0_130, %c0_131] : memref<64x128xf32, #tpu.memory_space<vmem>>, vector<16x128xf32>
    %213 = arith.maximumf %208, %212 : vector<16x128xf32>
    %c4_132 = arith.constant 4 : index
    %c0_133 = arith.constant 0 : index
    %214 = vector.load %arg6[%c4_132, %c0_133] : memref<64x128xf32, #tpu.memory_space<vmem>>, vector<16x128xf32>
    %215 = arith.maximumf %213, %214 : vector<16x128xf32>
    %c8_134 = arith.constant 8 : index
    %c0_135 = arith.constant 0 : index
    %216 = vector.load %arg6[%c8_134, %c0_135] : memref<64x128xf32, #tpu.memory_space<vmem>>, vector<16x128xf32>
    %217 = arith.maximumf %215, %216 : vector<16x128xf32>
    %c12_136 = arith.constant 12 : index
    %c0_137 = arith.constant 0 : index
    %218 = vector.load %arg6[%c12_136, %c0_137] : memref<64x128xf32, #tpu.memory_space<vmem>>, vector<16x128xf32>
    %219 = arith.maximumf %217, %218 : vector<16x128xf32>
    %c16_138 = arith.constant 16 : index
    %c0_139 = arith.constant 0 : index
    %220 = vector.load %arg6[%c16_138, %c0_139] : memref<64x128xf32, #tpu.memory_space<vmem>>, vector<16x128xf32>
    %221 = arith.maximumf %219, %220 : vector<16x128xf32>
    %c20_140 = arith.constant 20 : index
    %c0_141 = arith.constant 0 : index
    %222 = vector.load %arg6[%c20_140, %c0_141] : memref<64x128xf32, #tpu.memory_space<vmem>>, vector<16x128xf32>
    %223 = arith.maximumf %221, %222 : vector<16x128xf32>
    %c28_142 = arith.constant 28 : index
    %c0_143 = arith.constant 0 : index
    %224 = vector.load %arg6[%c28_142, %c0_143] : memref<64x128xf32, #tpu.memory_space<vmem>>, vector<16x128xf32>
    %225 = arith.maximumf %223, %224 : vector<16x128xf32>
    %c32_144 = arith.constant 32 : index
    %c0_145 = arith.constant 0 : index
    %226 = vector.load %arg6[%c32_144, %c0_145] : memref<64x128xf32, #tpu.memory_space<vmem>>, vector<16x128xf32>
    %227 = arith.maximumf %225, %226 : vector<16x128xf32>
    %c36_146 = arith.constant 36 : index
    %c0_147 = arith.constant 0 : index
    %228 = vector.load %arg6[%c36_146, %c0_147] : memref<64x128xf32, #tpu.memory_space<vmem>>, vector<16x128xf32>
    %229 = arith.maximumf %227, %228 : vector<16x128xf32>
    %c40_148 = arith.constant 40 : index
    %c0_149 = arith.constant 0 : index
    %230 = vector.load %arg6[%c40_148, %c0_149] : memref<64x128xf32, #tpu.memory_space<vmem>>, vector<16x128xf32>
    %231 = arith.maximumf %229, %230 : vector<16x128xf32>
    %c44 = arith.constant 44 : index
    %c0_150 = arith.constant 0 : index
    %232 = vector.load %arg6[%c44, %c0_150] : memref<64x128xf32, #tpu.memory_space<vmem>>, vector<16x128xf32>
    %233 = arith.maximumf %231, %232 : vector<16x128xf32>
    %c48 = arith.constant 48 : index
    %c0_151 = arith.constant 0 : index
    %234 = vector.load %arg6[%c48, %c0_151] : memref<64x128xf32, #tpu.memory_space<vmem>>, vector<16x128xf32>
    %235 = arith.maximumf %233, %234 : vector<16x128xf32>
    %236 = arith.truncf %235 : vector<16x128xf32> to vector<16x128xbf16>
    %c3_152 = arith.constant 3 : index
    %c0_153 = arith.constant 0 : index
    %c0_154 = arith.constant 0 : index
    %237 = vector.load %arg2[%c3_152, %c0_153, %c0_154] : memref<25x128x128xbf16, #tpu.memory_space<vmem>>, vector<1x128x128xbf16>
    %238 = vector.shape_cast %237 : vector<1x128x128xbf16> to vector<128x128xbf16>
    %cst_155 = arith.constant dense<0.000000e+00> : vector<16x128xf32>
    %239 = tpu.matmul %236, %238, %cst_155 {dimension_numbers = #tpu.dot_dimension_numbers<[1], [0], [0], [1], [0, 0, 1, 1], [], []>} : vector<16x128xbf16>, vector<128x128xbf16>, vector<16x128xf32> -> vector<16x128xf32>
    %240 = arith.addf %136, %239 : vector<16x128xf32>
    %c0_156 = arith.constant 0 : index
    %c0_157 = arith.constant 0 : index
    %241 = vector.load %arg3[%c0_156, %c0_157] : memref<6x128xf32, #tpu.memory_space<vmem>>, vector<1x128xf32>
    %242 = vector.broadcast %241 : vector<1x128xf32> to vector<16x128xf32>
    %243 = arith.addf %240, %242 : vector<16x128xf32>
    %cst_158 = arith.constant 1.000000e-01 : f32
    %244 = vector.broadcast %cst_158 : f32 to vector<16x128xf32>
    %245 = arith.mulf %244, %243 : vector<16x128xf32>
    %246 = arith.maximumf %243, %245 : vector<16x128xf32>
    %247 = arith.truncf %246 : vector<16x128xf32> to vector<16x128xbf16>
    %c4_159 = arith.constant 4 : index
    %c0_160 = arith.constant 0 : index
    %c0_161 = arith.constant 0 : index
    %248 = vector.load %arg2[%c4_159, %c0_160, %c0_161] : memref<25x128x128xbf16, #tpu.memory_space<vmem>>, vector<1x128x128xbf16>
    %249 = vector.shape_cast %248 : vector<1x128x128xbf16> to vector<128x128xbf16>
    %cst_162 = arith.constant dense<0.000000e+00> : vector<16x128xf32>
    %250 = tpu.matmul %247, %249, %cst_162 {dimension_numbers = #tpu.dot_dimension_numbers<[1], [0], [0], [1], [0, 0, 1, 1], [], []>} : vector<16x128xbf16>, vector<128x128xbf16>, vector<16x128xf32> -> vector<16x128xf32>
    %c1_163 = arith.constant 1 : index
    %c0_164 = arith.constant 0 : index
    %251 = vector.load %arg3[%c1_163, %c0_164] : memref<6x128xf32, #tpu.memory_space<vmem>>, vector<1x128xf32>
    %252 = vector.broadcast %251 : vector<1x128xf32> to vector<16x128xf32>
    %253 = arith.addf %250, %252 : vector<16x128xf32>
    %cst_165 = arith.constant 1.000000e-01 : f32
    %254 = vector.broadcast %cst_165 : f32 to vector<16x128xf32>
    %255 = arith.mulf %254, %253 : vector<16x128xf32>
    %256 = arith.maximumf %253, %255 : vector<16x128xf32>
    %cst_166 = arith.constant 0.000000e+00 : f32
    %257 = vector.broadcast %cst_166 : f32 to vector<26x128xf32>
    %c0_167 = arith.constant 0 : index
    %c0_168 = arith.constant 0 : index
    %258 = vector.load %arg7[%c0_167, %c0_168] : memref<26x128xf32, #tpu.memory_space<vmem>>, vector<26x128xf32>
    tpu.vector_store %arg7[%c0_167, %c0_168], %257 {strides = array<i32>} : memref<26x128xf32, #tpu.memory_space<vmem>>, vector<26x128xf32>,
    %c5_169 = arith.constant 5 : index
    %c0_170 = arith.constant 0 : index
    %259 = vector.load %arg7[%c5_169, %c0_170] : memref<26x128xf32, #tpu.memory_space<vmem>>, vector<16x128xf32>
    tpu.vector_store %arg7[%c5_169, %c0_170], %256 {strides = array<i32>} : memref<26x128xf32, #tpu.memory_space<vmem>>, vector<16x128xf32>,
    %c0_171 = arith.constant 0 : index
    %c0_172 = arith.constant 0 : index
    %260 = vector.load %arg7[%c0_171, %c0_172] : memref<26x128xf32, #tpu.memory_space<vmem>>, vector<16x128xf32>
    %c1_i32_173 = arith.constant 1 : i32
    %261 = vector.broadcast %c1_i32_173 : i32 to vector<16x128xi32>
    %262 = arith.cmpi sge, %17, %261 : vector<16x128xi32>
    %cst_174 = arith.constant 0.000000e+00 : f32
    %263 = vector.broadcast %cst_174 : f32 to vector<16x128xf32>
    %264 = arith.select %262, %260, %263 : vector<16x128xi1>, vector<16x128xf32>
    %265 = arith.truncf %264 : vector<16x128xf32> to vector<16x128xbf16>
    %c5_175 = arith.constant 5 : index
    %c0_176 = arith.constant 0 : index
    %c0_177 = arith.constant 0 : index
    %266 = vector.load %arg2[%c5_175, %c0_176, %c0_177] : memref<25x128x128xbf16, #tpu.memory_space<vmem>>, vector<1x128x128xbf16>
    %267 = vector.shape_cast %266 : vector<1x128x128xbf16> to vector<128x128xbf16>
    %cst_178 = arith.constant dense<0.000000e+00> : vector<16x128xf32>
    %268 = tpu.matmul %265, %267, %cst_178 {dimension_numbers = #tpu.dot_dimension_numbers<[1], [0], [0], [1], [0, 0, 1, 1], [], []>} : vector<16x128xbf16>, vector<128x128xbf16>, vector<16x128xf32> -> vector<16x128xf32>
    %c1_179 = arith.constant 1 : index
    %c0_180 = arith.constant 0 : index
    %269 = vector.load %arg7[%c1_179, %c0_180] : memref<26x128xf32, #tpu.memory_space<vmem>>, vector<16x128xf32>
    %270 = arith.truncf %269 : vector<16x128xf32> to vector<16x128xbf16>
    %c6_181 = arith.constant 6 : index
    %c0_182 = arith.constant 0 : index
    %c0_183 = arith.constant 0 : index
    %271 = vector.load %arg2[%c6_181, %c0_182, %c0_183] : memref<25x128x128xbf16, #tpu.memory_space<vmem>>, vector<1x128x128xbf16>
    %272 = vector.shape_cast %271 : vector<1x128x128xbf16> to vector<128x128xbf16>
    %cst_184 = arith.constant dense<0.000000e+00> : vector<16x128xf32>
    %273 = tpu.matmul %270, %272, %cst_184 {dimension_numbers = #tpu.dot_dimension_numbers<[1], [0], [0], [1], [0, 0, 1, 1], [], []>} : vector<16x128xbf16>, vector<128x128xbf16>, vector<16x128xf32> -> vector<16x128xf32>
    %274 = arith.addf %268, %273 : vector<16x128xf32>
    %c2_185 = arith.constant 2 : index
    %c0_186 = arith.constant 0 : index
    %275 = vector.load %arg7[%c2_185, %c0_186] : memref<26x128xf32, #tpu.memory_space<vmem>>, vector<16x128xf32>
    %c3_i32_187 = arith.constant 3 : i32
    %276 = vector.broadcast %c3_i32_187 : i32 to vector<16x128xi32>
    %277 = arith.cmpi slt, %17, %276 : vector<16x128xi32>
    %cst_188 = arith.constant 0.000000e+00 : f32
    %278 = vector.broadcast %cst_188 : f32 to vector<16x128xf32>
    %279 = arith.select %277, %275, %278 : vector<16x128xi1>, vector<16x128xf32>
    %280 = arith.truncf %279 : vector<16x128xf32> to vector<16x128xbf16>
    %c7_189 = arith.constant 7 : index
    %c0_190 = arith.constant 0 : index
    %c0_191 = arith.constant 0 : index
    %281 = vector.load %arg2[%c7_189, %c0_190, %c0_191] : memref<25x128x128xbf16, #tpu.memory_space<vmem>>, vector<1x128x128xbf16>
    %282 = vector.shape_cast %281 : vector<1x128x128xbf16> to vector<128x128xbf16>
    %cst_192 = arith.constant dense<0.000000e+00> : vector<16x128xf32>
    %283 = tpu.matmul %280, %282, %cst_192 {dimension_numbers = #tpu.dot_dimension_numbers<[1], [0], [0], [1], [0, 0, 1, 1], [], []>} : vector<16x128xbf16>, vector<128x128xbf16>, vector<16x128xf32> -> vector<16x128xf32>
    %284 = arith.addf %274, %283 : vector<16x128xf32>
    %c4_193 = arith.constant 4 : index
    %c0_194 = arith.constant 0 : index
    %285 = vector.load %arg7[%c4_193, %c0_194] : memref<26x128xf32, #tpu.memory_space<vmem>>, vector<16x128xf32>
    %c1_i32_195 = arith.constant 1 : i32
    %286 = vector.broadcast %c1_i32_195 : i32 to vector<16x128xi32>
    %287 = arith.cmpi sge, %17, %286 : vector<16x128xi32>
    %cst_196 = arith.constant 0.000000e+00 : f32
    %288 = vector.broadcast %cst_196 : f32 to vector<16x128xf32>
    %289 = arith.select %287, %285, %288 : vector<16x128xi1>, vector<16x128xf32>
    %290 = arith.truncf %289 : vector<16x128xf32> to vector<16x128xbf16>
    %c8_197 = arith.constant 8 : index
    %c0_198 = arith.constant 0 : index
    %c0_199 = arith.constant 0 : index
    %291 = vector.load %arg2[%c8_197, %c0_198, %c0_199] : memref<25x128x128xbf16, #tpu.memory_space<vmem>>, vector<1x128x128xbf16>
    %292 = vector.shape_cast %291 : vector<1x128x128xbf16> to vector<128x128xbf16>
    %cst_200 = arith.constant dense<0.000000e+00> : vector<16x128xf32>
    %293 = tpu.matmul %290, %292, %cst_200 {dimension_numbers = #tpu.dot_dimension_numbers<[1], [0], [0], [1], [0, 0, 1, 1], [], []>} : vector<16x128xbf16>, vector<128x128xbf16>, vector<16x128xf32> -> vector<16x128xf32>
    %294 = arith.addf %284, %293 : vector<16x128xf32>
    %c5_201 = arith.constant 5 : index
    %c0_202 = arith.constant 0 : index
    %295 = vector.load %arg7[%c5_201, %c0_202] : memref<26x128xf32, #tpu.memory_space<vmem>>, vector<16x128xf32>
    %296 = arith.truncf %295 : vector<16x128xf32> to vector<16x128xbf16>
    %c9_203 = arith.constant 9 : index
    %c0_204 = arith.constant 0 : index
    %c0_205 = arith.constant 0 : index
    %297 = vector.load %arg2[%c9_203, %c0_204, %c0_205] : memref<25x128x128xbf16, #tpu.memory_space<vmem>>, vector<1x128x128xbf16>
    %298 = vector.shape_cast %297 : vector<1x128x128xbf16> to vector<128x128xbf16>
    %cst_206 = arith.constant dense<0.000000e+00> : vector<16x128xf32>
    %299 = tpu.matmul %296, %298, %cst_206 {dimension_numbers = #tpu.dot_dimension_numbers<[1], [0], [0], [1], [0, 0, 1, 1], [], []>} : vector<16x128xbf16>, vector<128x128xbf16>, vector<16x128xf32> -> vector<16x128xf32>
    %300 = arith.addf %294, %299 : vector<16x128xf32>
    %c6_207 = arith.constant 6 : index
    %c0_208 = arith.constant 0 : index
    %301 = vector.load %arg7[%c6_207, %c0_208] : memref<26x128xf32, #tpu.memory_space<vmem>>, vector<16x128xf32>
    %c3_i32_209 = arith.constant 3 : i32
    %302 = vector.broadcast %c3_i32_209 : i32 to vector<16x128xi32>
    %303 = arith.cmpi slt, %17, %302 : vector<16x128xi32>
    %cst_210 = arith.constant 0.000000e+00 : f32
    %304 = vector.broadcast %cst_210 : f32 to vector<16x128xf32>
    %305 = arith.select %303, %301, %304 : vector<16x128xi1>, vector<16x128xf32>
    %306 = arith.truncf %305 : vector<16x128xf32> to vector<16x128xbf16>
    %c10_211 = arith.constant 10 : index
    %c0_212 = arith.constant 0 : index
    %c0_213 = arith.constant 0 : index
    %307 = vector.load %arg2[%c10_211, %c0_212, %c0_213] : memref<25x128x128xbf16, #tpu.memory_space<vmem>>, vector<1x128x128xbf16>
    %308 = vector.shape_cast %307 : vector<1x128x128xbf16> to vector<128x128xbf16>
    %cst_214 = arith.constant dense<0.000000e+00> : vector<16x128xf32>
    %309 = tpu.matmul %306, %308, %cst_214 {dimension_numbers = #tpu.dot_dimension_numbers<[1], [0], [0], [1], [0, 0, 1, 1], [], []>} : vector<16x128xbf16>, vector<128x128xbf16>, vector<16x128xf32> -> vector<16x128xf32>
    %310 = arith.addf %300, %309 : vector<16x128xf32>
    %c8_215 = arith.constant 8 : index
    %c0_216 = arith.constant 0 : index
    %311 = vector.load %arg7[%c8_215, %c0_216] : memref<26x128xf32, #tpu.memory_space<vmem>>, vector<16x128xf32>
    %c1_i32_217 = arith.constant 1 : i32
    %312 = vector.broadcast %c1_i32_217 : i32 to vector<16x128xi32>
    %313 = arith.cmpi sge, %17, %312 : vector<16x128xi32>
    %cst_218 = arith.constant 0.000000e+00 : f32
    %314 = vector.broadcast %cst_218 : f32 to vector<16x128xf32>
    %315 = arith.select %313, %311, %314 : vector<16x128xi1>, vector<16x128xf32>
    %316 = arith.truncf %315 : vector<16x128xf32> to vector<16x128xbf16>
    %c11_219 = arith.constant 11 : index
    %c0_220 = arith.constant 0 : index
    %c0_221 = arith.constant 0 : index
    %317 = vector.load %arg2[%c11_219, %c0_220, %c0_221] : memref<25x128x128xbf16, #tpu.memory_space<vmem>>, vector<1x128x128xbf16>
    %318 = vector.shape_cast %317 : vector<1x128x128xbf16> to vector<128x128xbf16>
    %cst_222 = arith.constant dense<0.000000e+00> : vector<16x128xf32>
    %319 = tpu.matmul %316, %318, %cst_222 {dimension_numbers = #tpu.dot_dimension_numbers<[1], [0], [0], [1], [0, 0, 1, 1], [], []>} : vector<16x128xbf16>, vector<128x128xbf16>, vector<16x128xf32> -> vector<16x128xf32>
    %320 = arith.addf %310, %319 : vector<16x128xf32>
    %c9_223 = arith.constant 9 : index
    %c0_224 = arith.constant 0 : index
    %321 = vector.load %arg7[%c9_223, %c0_224] : memref<26x128xf32, #tpu.memory_space<vmem>>, vector<16x128xf32>
    %322 = arith.truncf %321 : vector<16x128xf32> to vector<16x128xbf16>
    %c12_225 = arith.constant 12 : index
    %c0_226 = arith.constant 0 : index
    %c0_227 = arith.constant 0 : index
    %323 = vector.load %arg2[%c12_225, %c0_226, %c0_227] : memref<25x128x128xbf16, #tpu.memory_space<vmem>>, vector<1x128x128xbf16>
    %324 = vector.shape_cast %323 : vector<1x128x128xbf16> to vector<128x128xbf16>
    %cst_228 = arith.constant dense<0.000000e+00> : vector<16x128xf32>
    %325 = tpu.matmul %322, %324, %cst_228 {dimension_numbers = #tpu.dot_dimension_numbers<[1], [0], [0], [1], [0, 0, 1, 1], [], []>} : vector<16x128xbf16>, vector<128x128xbf16>, vector<16x128xf32> -> vector<16x128xf32>
    %326 = arith.addf %320, %325 : vector<16x128xf32>
    %c10_229 = arith.constant 10 : index
    %c0_230 = arith.constant 0 : index
    %327 = vector.load %arg7[%c10_229, %c0_230] : memref<26x128xf32, #tpu.memory_space<vmem>>, vector<16x128xf32>
    %c3_i32_231 = arith.constant 3 : i32
    %328 = vector.broadcast %c3_i32_231 : i32 to vector<16x128xi32>
    %329 = arith.cmpi slt, %17, %328 : vector<16x128xi32>
    %cst_232 = arith.constant 0.000000e+00 : f32
    %330 = vector.broadcast %cst_232 : f32 to vector<16x128xf32>
    %331 = arith.select %329, %327, %330 : vector<16x128xi1>, vector<16x128xf32>
    %332 = arith.truncf %331 : vector<16x128xf32> to vector<16x128xbf16>
    %c13 = arith.constant 13 : index
    %c0_233 = arith.constant 0 : index
    %c0_234 = arith.constant 0 : index
    %333 = vector.load %arg2[%c13, %c0_233, %c0_234] : memref<25x128x128xbf16, #tpu.memory_space<vmem>>, vector<1x128x128xbf16>
    %334 = vector.shape_cast %333 : vector<1x128x128xbf16> to vector<128x128xbf16>
    %cst_235 = arith.constant dense<0.000000e+00> : vector<16x128xf32>
    %335 = tpu.matmul %332, %334, %cst_235 {dimension_numbers = #tpu.dot_dimension_numbers<[1], [0], [0], [1], [0, 0, 1, 1], [], []>} : vector<16x128xbf16>, vector<128x128xbf16>, vector<16x128xf32> -> vector<16x128xf32>
    %336 = arith.addf %326, %335 : vector<16x128xf32>
    %c2_236 = arith.constant 2 : index
    %c0_237 = arith.constant 0 : index
    %337 = vector.load %arg3[%c2_236, %c0_237] : memref<6x128xf32, #tpu.memory_space<vmem>>, vector<1x128xf32>
    %338 = vector.broadcast %337 : vector<1x128xf32> to vector<16x128xf32>
    %339 = arith.addf %336, %338 : vector<16x128xf32>
    %cst_238 = arith.constant 1.000000e-01 : f32
    %340 = vector.broadcast %cst_238 : f32 to vector<16x128xf32>
    %341 = arith.mulf %340, %339 : vector<16x128xf32>
    %342 = arith.maximumf %339, %341 : vector<16x128xf32>
    %343 = arith.truncf %342 : vector<16x128xf32> to vector<16x128xbf16>
    %c14 = arith.constant 14 : index
    %c0_239 = arith.constant 0 : index
    %c0_240 = arith.constant 0 : index
    %344 = vector.load %arg2[%c14, %c0_239, %c0_240] : memref<25x128x128xbf16, #tpu.memory_space<vmem>>, vector<1x128x128xbf16>
    %345 = vector.shape_cast %344 : vector<1x128x128xbf16> to vector<128x128xbf16>
    %cst_241 = arith.constant dense<0.000000e+00> : vector<16x128xf32>
    %346 = tpu.matmul %343, %345, %cst_241 {dimension_numbers = #tpu.dot_dimension_numbers<[1], [0], [0], [1], [0, 0, 1, 1], [], []>} : vector<16x128xbf16>, vector<128x128xbf16>, vector<16x128xf32> -> vector<16x128xf32>
    %c3_242 = arith.constant 3 : index
    %c0_243 = arith.constant 0 : index
    %347 = vector.load %arg3[%c3_242, %c0_243] : memref<6x128xf32, #tpu.memory_space<vmem>>, vector<1x128xf32>
    %348 = vector.broadcast %347 : vector<1x128xf32> to vector<16x128xf32>
    %349 = arith.addf %346, %348 : vector<16x128xf32>
    %cst_244 = arith.constant 1.000000e-01 : f32
    %350 = vector.broadcast %cst_244 : f32 to vector<16x128xf32>
    %351 = arith.mulf %350, %349 : vector<16x128xf32>
    %352 = arith.maximumf %349, %351 : vector<16x128xf32>
    %cst_245 = arith.constant 0.000000e+00 : f32
    %353 = vector.broadcast %cst_245 : f32 to vector<26x128xf32>
    %c0_246 = arith.constant 0 : index
    %c0_247 = arith.constant 0 : index
    %354 = vector.load %arg7[%c0_246, %c0_247] : memref<26x128xf32, #tpu.memory_space<vmem>>, vector<26x128xf32>
    tpu.vector_store %arg7[%c0_246, %c0_247], %353 {strides = array<i32>} : memref<26x128xf32, #tpu.memory_space<vmem>>, vector<26x128xf32>,
    %c5_248 = arith.constant 5 : index
    %c0_249 = arith.constant 0 : index
    %355 = vector.load %arg7[%c5_248, %c0_249] : memref<26x128xf32, #tpu.memory_space<vmem>>, vector<16x128xf32>
    tpu.vector_store %arg7[%c5_248, %c0_249], %352 {strides = array<i32>} : memref<26x128xf32, #tpu.memory_space<vmem>>, vector<16x128xf32>,
    %c0_250 = arith.constant 0 : index
    %c0_251 = arith.constant 0 : index
    %356 = vector.load %arg7[%c0_250, %c0_251] : memref<26x128xf32, #tpu.memory_space<vmem>>, vector<16x128xf32>
    %c1_i32_252 = arith.constant 1 : i32
    %357 = vector.broadcast %c1_i32_252 : i32 to vector<16x128xi32>
    %358 = arith.cmpi sge, %17, %357 : vector<16x128xi32>
    %cst_253 = arith.constant 0.000000e+00 : f32
    %359 = vector.broadcast %cst_253 : f32 to vector<16x128xf32>
    %360 = arith.select %358, %356, %359 : vector<16x128xi1>, vector<16x128xf32>
    %361 = arith.truncf %360 : vector<16x128xf32> to vector<16x128xbf16>
    %c15 = arith.constant 15 : index
    %c0_254 = arith.constant 0 : index
    %c0_255 = arith.constant 0 : index
    %362 = vector.load %arg2[%c15, %c0_254, %c0_255] : memref<25x128x128xbf16, #tpu.memory_space<vmem>>, vector<1x128x128xbf16>
    %363 = vector.shape_cast %362 : vector<1x128x128xbf16> to vector<128x128xbf16>
    %cst_256 = arith.constant dense<0.000000e+00> : vector<16x128xf32>
    %364 = tpu.matmul %361, %363, %cst_256 {dimension_numbers = #tpu.dot_dimension_numbers<[1], [0], [0], [1], [0, 0, 1, 1], [], []>} : vector<16x128xbf16>, vector<128x128xbf16>, vector<16x128xf32> -> vector<16x128xf32>
    %c1_257 = arith.constant 1 : index
    %c0_258 = arith.constant 0 : index
    %365 = vector.load %arg7[%c1_257, %c0_258] : memref<26x128xf32, #tpu.memory_space<vmem>>, vector<16x128xf32>
    %366 = arith.truncf %365 : vector<16x128xf32> to vector<16x128xbf16>
    %c16_259 = arith.constant 16 : index
    %c0_260 = arith.constant 0 : index
    %c0_261 = arith.constant 0 : index
    %367 = vector.load %arg2[%c16_259, %c0_260, %c0_261] : memref<25x128x128xbf16, #tpu.memory_space<vmem>>, vector<1x128x128xbf16>
    %368 = vector.shape_cast %367 : vector<1x128x128xbf16> to vector<128x128xbf16>
    %cst_262 = arith.constant dense<0.000000e+00> : vector<16x128xf32>
    %369 = tpu.matmul %366, %368, %cst_262 {dimension_numbers = #tpu.dot_dimension_numbers<[1], [0], [0], [1], [0, 0, 1, 1], [], []>} : vector<16x128xbf16>, vector<128x128xbf16>, vector<16x128xf32> -> vector<16x128xf32>
    %370 = arith.addf %364, %369 : vector<16x128xf32>
    %c2_263 = arith.constant 2 : index
    %c0_264 = arith.constant 0 : index
    %371 = vector.load %arg7[%c2_263, %c0_264] : memref<26x128xf32, #tpu.memory_space<vmem>>, vector<16x128xf32>
    %c3_i32_265 = arith.constant 3 : i32
    %372 = vector.broadcast %c3_i32_265 : i32 to vector<16x128xi32>
    %373 = arith.cmpi slt, %17, %372 : vector<16x128xi32>
    %cst_266 = arith.constant 0.000000e+00 : f32
    %374 = vector.broadcast %cst_266 : f32 to vector<16x128xf32>
    %375 = arith.select %373, %371, %374 : vector<16x128xi1>, vector<16x128xf32>
    %376 = arith.truncf %375 : vector<16x128xf32> to vector<16x128xbf16>
    %c17 = arith.constant 17 : index
    %c0_267 = arith.constant 0 : index
    %c0_268 = arith.constant 0 : index
    %377 = vector.load %arg2[%c17, %c0_267, %c0_268] : memref<25x128x128xbf16, #tpu.memory_space<vmem>>, vector<1x128x128xbf16>
    %378 = vector.shape_cast %377 : vector<1x128x128xbf16> to vector<128x128xbf16>
    %cst_269 = arith.constant dense<0.000000e+00> : vector<16x128xf32>
    %379 = tpu.matmul %376, %378, %cst_269 {dimension_numbers = #tpu.dot_dimension_numbers<[1], [0], [0], [1], [0, 0, 1, 1], [], []>} : vector<16x128xbf16>, vector<128x128xbf16>, vector<16x128xf32> -> vector<16x128xf32>
    %380 = arith.addf %370, %379 : vector<16x128xf32>
    %c4_270 = arith.constant 4 : index
    %c0_271 = arith.constant 0 : index
    %381 = vector.load %arg7[%c4_270, %c0_271] : memref<26x128xf32, #tpu.memory_space<vmem>>, vector<16x128xf32>
    %c1_i32_272 = arith.constant 1 : i32
    %382 = vector.broadcast %c1_i32_272 : i32 to vector<16x128xi32>
    %383 = arith.cmpi sge, %17, %382 : vector<16x128xi32>
    %cst_273 = arith.constant 0.000000e+00 : f32
    %384 = vector.broadcast %cst_273 : f32 to vector<16x128xf32>
    %385 = arith.select %383, %381, %384 : vector<16x128xi1>, vector<16x128xf32>
    %386 = arith.truncf %385 : vector<16x128xf32> to vector<16x128xbf16>
    %c18 = arith.constant 18 : index
    %c0_274 = arith.constant 0 : index
    %c0_275 = arith.constant 0 : index
    %387 = vector.load %arg2[%c18, %c0_274, %c0_275] : memref<25x128x128xbf16, #tpu.memory_space<vmem>>, vector<1x128x128xbf16>
    %388 = vector.shape_cast %387 : vector<1x128x128xbf16> to vector<128x128xbf16>
    %cst_276 = arith.constant dense<0.000000e+00> : vector<16x128xf32>
    %389 = tpu.matmul %386, %388, %cst_276 {dimension_numbers = #tpu.dot_dimension_numbers<[1], [0], [0], [1], [0, 0, 1, 1], [], []>} : vector<16x128xbf16>, vector<128x128xbf16>, vector<16x128xf32> -> vector<16x128xf32>
    %390 = arith.addf %380, %389 : vector<16x128xf32>
    %c5_277 = arith.constant 5 : index
    %c0_278 = arith.constant 0 : index
    %391 = vector.load %arg7[%c5_277, %c0_278] : memref<26x128xf32, #tpu.memory_space<vmem>>, vector<16x128xf32>
    %392 = arith.truncf %391 : vector<16x128xf32> to vector<16x128xbf16>
    %c19 = arith.constant 19 : index
    %c0_279 = arith.constant 0 : index
    %c0_280 = arith.constant 0 : index
    %393 = vector.load %arg2[%c19, %c0_279, %c0_280] : memref<25x128x128xbf16, #tpu.memory_space<vmem>>, vector<1x128x128xbf16>
    %394 = vector.shape_cast %393 : vector<1x128x128xbf16> to vector<128x128xbf16>
    %cst_281 = arith.constant dense<0.000000e+00> : vector<16x128xf32>
    %395 = tpu.matmul %392, %394, %cst_281 {dimension_numbers = #tpu.dot_dimension_numbers<[1], [0], [0], [1], [0, 0, 1, 1], [], []>} : vector<16x128xbf16>, vector<128x128xbf16>, vector<16x128xf32> -> vector<16x128xf32>
    %396 = arith.addf %390, %395 : vector<16x128xf32>
    %c6_282 = arith.constant 6 : index
    %c0_283 = arith.constant 0 : index
    %397 = vector.load %arg7[%c6_282, %c0_283] : memref<26x128xf32, #tpu.memory_space<vmem>>, vector<16x128xf32>
    %c3_i32_284 = arith.constant 3 : i32
    %398 = vector.broadcast %c3_i32_284 : i32 to vector<16x128xi32>
    %399 = arith.cmpi slt, %17, %398 : vector<16x128xi32>
    %cst_285 = arith.constant 0.000000e+00 : f32
    %400 = vector.broadcast %cst_285 : f32 to vector<16x128xf32>
    %401 = arith.select %399, %397, %400 : vector<16x128xi1>, vector<16x128xf32>
    %402 = arith.truncf %401 : vector<16x128xf32> to vector<16x128xbf16>
    %c20_286 = arith.constant 20 : index
    %c0_287 = arith.constant 0 : index
    %c0_288 = arith.constant 0 : index
    %403 = vector.load %arg2[%c20_286, %c0_287, %c0_288] : memref<25x128x128xbf16, #tpu.memory_space<vmem>>, vector<1x128x128xbf16>
    %404 = vector.shape_cast %403 : vector<1x128x128xbf16> to vector<128x128xbf16>
    %cst_289 = arith.constant dense<0.000000e+00> : vector<16x128xf32>
    %405 = tpu.matmul %402, %404, %cst_289 {dimension_numbers = #tpu.dot_dimension_numbers<[1], [0], [0], [1], [0, 0, 1, 1], [], []>} : vector<16x128xbf16>, vector<128x128xbf16>, vector<16x128xf32> -> vector<16x128xf32>
    %406 = arith.addf %396, %405 : vector<16x128xf32>
    %c8_290 = arith.constant 8 : index
    %c0_291 = arith.constant 0 : index
    %407 = vector.load %arg7[%c8_290, %c0_291] : memref<26x128xf32, #tpu.memory_space<vmem>>, vector<16x128xf32>
    %c1_i32_292 = arith.constant 1 : i32
    %408 = vector.broadcast %c1_i32_292 : i32 to vector<16x128xi32>
    %409 = arith.cmpi sge, %17, %408 : vector<16x128xi32>
    %cst_293 = arith.constant 0.000000e+00 : f32
    %410 = vector.broadcast %cst_293 : f32 to vector<16x128xf32>
    %411 = arith.select %409, %407, %410 : vector<16x128xi1>, vector<16x128xf32>
    %412 = arith.truncf %411 : vector<16x128xf32> to vector<16x128xbf16>
    %c21 = arith.constant 21 : index
    %c0_294 = arith.constant 0 : index
    %c0_295 = arith.constant 0 : index
    %413 = vector.load %arg2[%c21, %c0_294, %c0_295] : memref<25x128x128xbf16, #tpu.memory_space<vmem>>, vector<1x128x128xbf16>
    %414 = vector.shape_cast %413 : vector<1x128x128xbf16> to vector<128x128xbf16>
    %cst_296 = arith.constant dense<0.000000e+00> : vector<16x128xf32>
    %415 = tpu.matmul %412, %414, %cst_296 {dimension_numbers = #tpu.dot_dimension_numbers<[1], [0], [0], [1], [0, 0, 1, 1], [], []>} : vector<16x128xbf16>, vector<128x128xbf16>, vector<16x128xf32> -> vector<16x128xf32>
    %416 = arith.addf %406, %415 : vector<16x128xf32>
    %c9_297 = arith.constant 9 : index
    %c0_298 = arith.constant 0 : index
    %417 = vector.load %arg7[%c9_297, %c0_298] : memref<26x128xf32, #tpu.memory_space<vmem>>, vector<16x128xf32>
    %418 = arith.truncf %417 : vector<16x128xf32> to vector<16x128xbf16>
    %c22 = arith.constant 22 : index
    %c0_299 = arith.constant 0 : index
    %c0_300 = arith.constant 0 : index
    %419 = vector.load %arg2[%c22, %c0_299, %c0_300] : memref<25x128x128xbf16, #tpu.memory_space<vmem>>, vector<1x128x128xbf16>
    %420 = vector.shape_cast %419 : vector<1x128x128xbf16> to vector<128x128xbf16>
    %cst_301 = arith.constant dense<0.000000e+00> : vector<16x128xf32>
    %421 = tpu.matmul %418, %420, %cst_301 {dimension_numbers = #tpu.dot_dimension_numbers<[1], [0], [0], [1], [0, 0, 1, 1], [], []>} : vector<16x128xbf16>, vector<128x128xbf16>, vector<16x128xf32> -> vector<16x128xf32>
    %422 = arith.addf %416, %421 : vector<16x128xf32>
    %c10_302 = arith.constant 10 : index
    %c0_303 = arith.constant 0 : index
    %423 = vector.load %arg7[%c10_302, %c0_303] : memref<26x128xf32, #tpu.memory_space<vmem>>, vector<16x128xf32>
    %c3_i32_304 = arith.constant 3 : i32
    %424 = vector.broadcast %c3_i32_304 : i32 to vector<16x128xi32>
    %425 = arith.cmpi slt, %17, %424 : vector<16x128xi32>
    %cst_305 = arith.constant 0.000000e+00 : f32
    %426 = vector.broadcast %cst_305 : f32 to vector<16x128xf32>
    %427 = arith.select %425, %423, %426 : vector<16x128xi1>, vector<16x128xf32>
    %428 = arith.truncf %427 : vector<16x128xf32> to vector<16x128xbf16>
    %c23 = arith.constant 23 : index
    %c0_306 = arith.constant 0 : index
    %c0_307 = arith.constant 0 : index
    %429 = vector.load %arg2[%c23, %c0_306, %c0_307] : memref<25x128x128xbf16, #tpu.memory_space<vmem>>, vector<1x128x128xbf16>
    %430 = vector.shape_cast %429 : vector<1x128x128xbf16> to vector<128x128xbf16>
    %cst_308 = arith.constant dense<0.000000e+00> : vector<16x128xf32>
    %431 = tpu.matmul %428, %430, %cst_308 {dimension_numbers = #tpu.dot_dimension_numbers<[1], [0], [0], [1], [0, 0, 1, 1], [], []>} : vector<16x128xbf16>, vector<128x128xbf16>, vector<16x128xf32> -> vector<16x128xf32>
    %432 = arith.addf %422, %431 : vector<16x128xf32>
    %c4_309 = arith.constant 4 : index
    %c0_310 = arith.constant 0 : index
    %433 = vector.load %arg3[%c4_309, %c0_310] : memref<6x128xf32, #tpu.memory_space<vmem>>, vector<1x128xf32>
    %434 = vector.broadcast %433 : vector<1x128xf32> to vector<16x128xf32>
    %435 = arith.addf %432, %434 : vector<16x128xf32>
    %cst_311 = arith.constant 1.000000e-01 : f32
    %436 = vector.broadcast %cst_311 : f32 to vector<16x128xf32>
    %437 = arith.mulf %436, %435 : vector<16x128xf32>
    %438 = arith.maximumf %435, %437 : vector<16x128xf32>
    %439 = arith.truncf %438 : vector<16x128xf32> to vector<16x128xbf16>
    %c24_312 = arith.constant 24 : index
    %c0_313 = arith.constant 0 : index
    %c0_314 = arith.constant 0 : index
    %440 = vector.load %arg2[%c24_312, %c0_313, %c0_314] : memref<25x128x128xbf16, #tpu.memory_space<vmem>>, vector<1x128x128xbf16>
    %441 = vector.shape_cast %440 : vector<1x128x128xbf16> to vector<128x128xbf16>
    %cst_315 = arith.constant dense<0.000000e+00> : vector<16x128xf32>
    %442 = tpu.matmul %439, %441, %cst_315 {dimension_numbers = #tpu.dot_dimension_numbers<[1], [0], [0], [1], [0, 0, 1, 1], [], []>} : vector<16x128xbf16>, vector<128x128xbf16>, vector<16x128xf32> -> vector<16x128xf32>
    %c5_316 = arith.constant 5 : index
    %c0_317 = arith.constant 0 : index
    %443 = vector.load %arg3[%c5_316, %c0_317] : memref<6x128xf32, #tpu.memory_space<vmem>>, vector<1x128xf32>
    %444 = vector.broadcast %443 : vector<1x128xf32> to vector<16x128xf32>
    %445 = arith.addf %442, %444 : vector<16x128xf32>
    %c0_318 = arith.constant 0 : index
    %c0_319 = arith.constant 0 : index
    %446 = vector.load %arg4[%c0_318, %c0_319] : memref<16x128xf32, #tpu.memory_space<vmem>>, vector<16x128xf32>
    tpu.vector_store %arg4[%c0_318, %c0_319], %445 {strides = array<i32>} : memref<16x128xf32, #tpu.memory_space<vmem>>, vector<16x128xf32>,
    return
  }
  func.func @transform_0(%arg0: i32) -> (i32, i32) {
    %c0_i32 = arith.constant 0 : i32
    %c0_i32_0 = arith.constant 0 : i32
    %c0_i32_1 = arith.constant 0 : i32
    return %c0_i32, %c0_i32_0 : i32, i32
  }
  func.func @transform_1(%arg0: i32) -> (i32, i32, i32) {
    %c0_i32 = arith.constant 0 : i32
    %c0_i32_0 = arith.constant 0 : i32
    %c0_i32_1 = arith.constant 0 : i32
    %c0_i32_2 = arith.constant 0 : i32
    return %c0_i32, %c0_i32_0, %c0_i32_1 : i32, i32, i32
  }
  func.func @transform_2(%arg0: i32) -> (i32, i32) {
    %c0_i32 = arith.constant 0 : i32
    %c0_i32_0 = arith.constant 0 : i32
    %c0_i32_1 = arith.constant 0 : i32
    return %c0_i32, %c0_i32_0 : i32, i32
  }
  func.func @transform_3(%arg0: i32) -> (i32, i32) {
    %c0_i32 = arith.constant 0 : i32
    %c0_i32_0 = arith.constant 0 : i32
    %c0_i32_1 = arith.constant 0 : i32
    return %c0_i32, %c0_i32_0 : i32, i32
  }
}

</mosaic_0001>

<bundles_post_ra>
// kernel: myyolo_core.1
= control target key start
LH: loop header
LB: loop body
LE: loop exit
PB: predicated region body
PF: predicated region fallthrough
CT: control target
= control target key end

     0   :  { %8 = vsyncpa [#allocation6], 0  ;;  %s4376_s12 = smov [#allocation5]   ;;  %s4903_s0 = inlined_call_operand.vmem [shape: f32[16,128], index: 0, kind: input, shape index: {}]   ;;  %s4904_s1 = inlined_call_operand.hbm [shape: bf16[25,128,128], index: 1, kind: input, shape index: {}]   ;;  %s4905_s2 = inlined_call_operand.vmem [shape: f32[6,128], index: 2, kind: input, shape index: {}]   ;;  %s4906_s3 = inlined_call_operand.vmem [shape: f32[16,128], index: 3, kind: output, shape index: {}]  }
   0x1   :  { %s16_s13 = sshll.u32 %s4376_s12, 4  ;;  %s17_s13 = int_to_ptr.vmem [resolvable:$true] %s16_s13 }
   0x2   :  { %s4362_s14 = scalar_lea.vmem %s17_s13, 25600  ;;  %p4367_p1 = scmp.lt.s32.totalorder %s17_s13, %s17_s13 }
   0x3   :  { %p4363_p0 = scmp.ne.s32.totalorder %s17_s13, %s4362_s14  ;;  %p4368_p2 = scmp.lt.s32.totalorder %s4362_s14, %s4362_s14 }
   0x5   :  { %p4369_p3 = por %p4368_p2, %p4367_p1 }
   0x7   :  { %p4370_p4 = pnand %p4369_p3, %p4363_p0 }
   0x9   :  { %4373 = shalt.err (!%p4370_p4)
}
   0xa   :  { %s4377_s15 = smov 64   ;;  %s4378_s16 = smov 4  }
   0xb   :  { %22 = dma.hbm_to_vmem [thread:$0]  %s4904_s1, 25600, %s17_s13, [#allocation6], %s4377_s15, %s4377_s15, %s4378_s16  }
   0xc   :  { %4374 = dma.done.wait [#allocation6], 25600  }
   0xd   :  { %4375 = vsyncadd [#allocation6], 4294941696  ;;  %v4379_v0 = vmov 0.0   ;;  %v4380_v1 = vmov -1e+30   ;;  %vm4381_vm0 = vmmov 0   ;;  %v31_v3 = vlaneseq }
   0xe   :  { %3667 = vmatprep.subr.bf16.mxu1 %v4379_v0  ;;  %897 = vst [vmem:[#allocation4] sm:$0xff] %v4379_v0  ;;  %898 = vst [vmem:[#allocation4 + $0x8] sm:$0xff] %v4379_v0  ;;  %3647 = vmatprep.subr.bf16.mxu0 %v4379_v0  ;;  %v4153_v2 = vld [vmem:[#allocation5 + $0x38] sm:$0xff]   ;;  %v4155_v5 = vld [vmem:[#allocation5 + $0x30] sm:$0xff]  }
   0xf   :  { %899 = vst [vmem:[#allocation4 + $0x10] sm:$0xff] %v4379_v0  ;;  %900 = vst [vmem:[#allocation4 + $0x18] sm:$0x3] %v4379_v0  ;;  %3683 = vmatprep.mubr.msk.bf16.mxu1 %vm4381_vm0, %v4379_v0  ;;  %3663 = vmatprep.mubr.msk.bf16.mxu0 %vm4381_vm0, %v4379_v0  ;;  %v4154_v4 = vld [vmem:[#allocation5 + $0x78] sm:$0xff]   ;;  %v4156_v6 = vld [vmem:[#allocation5 + $0x70] sm:$0xff]   ;;  %v32_v7 = vshrl.u32 %v31_v3, 7 }
  0x10   :  { %58 = vst [vmem:[#allocation2] sm:$0xff] %v4380_v1  ;;  %59 = vst [vmem:[#allocation2 + $0x8] sm:$0xff] %v4380_v1  ;;  %3668 = vmatpush3.bf16.msra.mxu1 %v4153_v2  ;;  %3648 = vmatpush3.bf16.msra.mxu0 %v4154_v4  ;;  %v4157_v8 = vld [vmem:[#allocation5 + $0x28] sm:$0xff]   ;;  %v4159_v11 = vld [vmem:[#allocation5 + $0x20] sm:$0xff]  }
  0x11   :  { %60 = vst [vmem:[#allocation2 + $0x10] sm:$0xff] %v4380_v1  ;;  %61 = vst [vmem:[#allocation2 + $0x18] sm:$0xf] %v4380_v1  ;;  %3669 = vmatprep.subr.bf16.mxu1 %v4379_v0  ;;  %3649 = vmatprep.subr.bf16.mxu0 %v4379_v0  ;;  %v4158_v9 = vld [vmem:[#allocation5 + $0x68] sm:$0xff]   ;;  %v33_v10 = vadd.s32 8, %v32_v7  ;;  %v4429_v12 = vand.u32 3, %v32_v7 }
  0x12   :  { %115 = vst [vmem:[#allocation3 + $0x10] sm:$0xff] %v4380_v1  ;;  %118 = vst [vmem:[#allocation3 + $0x28] sm:$0xff] %v4380_v1  ;;  %v4160_v13 = vld [vmem:[#allocation5 + $0x60] sm:$0xff]   ;;  %v4161_v15 = vld [vmem:[#allocation5 + $0x18] sm:$0xff]  }
  0x13   :  { %390 = vst [vmem:[#allocation3 + $0x8] sm:$0xff] %v4380_v1  ;;  %395 = vst [vmem:[#allocation3 + $0x30] sm:$0xff] %v4380_v1  ;;  %v4433_v14 = vand.u32 3, %v33_v10  ;;  %vm83_vm1 = vcmp.ge.s32.totalorder %v4429_v12, 2  ;;  %v4162_v16 = vld [vmem:[#allocation5 + $0x58] sm:$0xff]   ;;  %vm91_vm2 = vcmp.ge.s32.totalorder %v4429_v12, 1 }
  0x14   :  { %611 = vst [vmem:[#allocation3] sm:$0xff] %v4380_v1  ;;  %618 = vst [vmem:[#allocation3 + $0x38] sm:$0xff] %v4380_v1  ;;  %3670 = vmatpush3.bf16.msra.mxu1 %v4155_v5  ;;  %3650 = vmatpush3.bf16.msra.mxu0 %v4156_v6  ;;  %v4442_v17 = vld [vmem:[%s4903_s0] sm:$0xff]  ;;  %v4447_v18 = vld [vmem:[%s4903_s0 + $0x8] sm:$0xff]  ;;  %vm344_vm4 = vcmp.ge.s32.totalorder %v4429_v12, 3  ;;  %vm99_vm6 = vcmp.lt.s32.totalorder %v4429_v12, 3 }
  0x15   :  { %3671 = vmatprep.subr.bf16.mxu1 %v4379_v0  ;;  %3651 = vmatprep.subr.bf16.mxu0 %v4379_v0  ;;  %vm84_vm3 = vcmp.ge.s32.totalorder %v4433_v14, 2  ;;  %62 = vst [vmem:[#allocation2 + $0x6] sm:$0xff] %v4442_v17  ;;  %63 = vst [vmem:[#allocation2 + $0xe] sm:$0xff] %v4447_v18  ;;  %v340_v19 = vmax.f32 %v4442_v17, -1e+30  ;;  %v4163_v21 = vld [vmem:[#allocation5 + $0x10] sm:$0xff]   ;;  %v64_v44 = vpack.c.bf16 %v4447_v18, %v4442_v17 }
  0x16   :  { %v341_v20 = vmax.f32 %v4447_v18, -1e+30  ;;  %vm92_vm5 = vcmp.ge.s32.totalorder %v4433_v14, 1  ;;  %v4164_v22 = vld [vmem:[#allocation5 + $0x50] sm:$0xff]   ;;  %vm100_vm7 = vcmp.lt.s32.totalorder %v4433_v14, 3  ;;  %v4165_v25 = vld [vmem:[#allocation5 + $0x8] sm:$0xff]  }
  0x17   :  { %v549_v23 = vmax.f32 %v340_v19, -1e+30  ;;  %vm345_vm8 = vcmp.ge.s32.totalorder %v4433_v14, 3  ;;  %vm107_vm9 = vcmp.lt.s32.totalorder %v4429_v12, 2  ;;  %vm108_vm10 = vcmp.lt.s32.totalorder %v4433_v14, 2  ;;  %v4166_v26 = vld [vmem:[#allocation5 + $0x48] sm:$0xff]   ;;  %vm4602_vm13 = vmpackc.low %vm92_vm5, %vm91_vm2 }
  0x18   :  { %3672 = vmatpush3.bf16.msra.mxu1 %v4157_v8  ;;  %3652 = vmatpush3.bf16.msra.mxu0 %v4158_v9  ;;  %v550_v24 = vmax.f32 %v341_v20, -1e+30  ;;  %vm376_vm11 = vcmp.lt.s32.totalorder %v4429_v12, 1  ;;  %v4167_v28 = vld [vmem:[#allocation5] sm:$0xff]   ;;  %vm377_vm12 = vcmp.lt.s32.totalorder %v4433_v14, 1  ;;  %v4170_v59 = vld [vmem:[#allocation5 + $0xf8] sm:$0xff]   ;;  %vm4660_vm14 = vmpackc.low %vm100_vm7, %vm99_vm6 }
  0x19   :  { %3673 = vmatprep.subr.bf16.mxu1 %v4379_v0  ;;  %3653 = vmatprep.subr.bf16.mxu0 %v4379_v0  ;;  %v555_v27 = vmax.f32 %v549_v23, -1e+30  ;;  %v4168_v43 = vld [vmem:[#allocation5 + $0x40] sm:$0xff]   ;;  %v4227_v12 = vld [vmem:[#allocation5 + $0x270] sm:$0xff]  }
  0x1a   :  { %v556_v32 = vmax.f32 %v550_v24, -1e+30  ;;  %v4228_v14 = vld [vmem:[#allocation5 + $0x2b0] sm:$0xff]  }
  0x1c   :  { %3674 = vmatpush3.bf16.msra.mxu1 %v4159_v11  ;;  %3654 = vmatpush3.bf16.msra.mxu0 %v4160_v13  ;;  %v81_v29 = vld [vmem:[#allocation2 + $0x4] sm:$0xff]  ;;  %v82_v30 = vld [vmem:[#allocation2 + $0xc] sm:$0xff] }
  0x1d   :  { %3675 = vmatprep.subr.bf16.mxu1 %v4379_v0  ;;  %3655 = vmatprep.subr.bf16.mxu0 %v4379_v0  ;;  %v89_v31 = vld [vmem:[#allocation2 + $0x5] sm:$0xff]  ;;  %v85_v33 = vsel %vm83_vm1, %v81_v29, -1e+30  ;;  %v86_v34 = vsel %vm84_vm3, %v82_v30, -1e+30  ;;  %v90_v35 = vld [vmem:[#allocation2 + $0xd] sm:$0xff] }
  0x1e   :  { %v342_v36 = vld [vmem:[#allocation2 + $0x3] sm:$0xff]  ;;  %v87_v37 = vmax.f32 %v4442_v17, %v85_v33  ;;  %v88_v38 = vmax.f32 %v4447_v18, %v86_v34  ;;  %v93_v39 = vsel %vm91_vm2, %v89_v31, -1e+30  ;;  %v94_v40 = vsel %vm92_vm5, %v90_v35, -1e+30  ;;  %v343_v41 = vld [vmem:[#allocation2 + $0xb] sm:$0xff] }
  0x1f   :  { %v362_v42 = vld [vmem:[#allocation2 + $0x7] sm:$0xff]  ;;  %v346_v45 = vsel %vm344_vm4, %v342_v36, -1e+30  ;;  %v347_v46 = vsel %vm345_vm8, %v343_v41, -1e+30  ;;  %v363_v47 = vld [vmem:[#allocation2 + $0xf] sm:$0xff] }
  0x20   :  { %3676 = vmatpush3.bf16.msra.mxu1 %v4161_v15  ;;  %3656 = vmatpush3.bf16.msra.mxu0 %v4162_v16  ;;  %v95_v48 = vmax.f32 %v87_v37, %v93_v39  ;;  %v96_v49 = vmax.f32 %v88_v38, %v94_v40  ;;  %v348_v50 = vmax.f32 %v340_v19, %v346_v45  ;;  %v105_v52 = vld [vmem:[#allocation2 + $0x8] sm:$0xff]  ;;  %v106_v53 = vld [vmem:[#allocation2 + $0x10] sm:$0xff]  ;;  %v364_v54 = vsel %vm99_vm6, %v362_v42, -1e+30  ;;  %v4176_v42 = vld [vmem:[#allocation5 + $0xe0] sm:$0xff]  }
  0x21   :  { %3677 = vmatprep.subr.bf16.mxu1 %v4379_v0  ;;  %3657 = vmatprep.subr.bf16.mxu0 %v4379_v0  ;;  %v349_v51 = vmax.f32 %v341_v20, %v347_v46  ;;  %v365_v55 = vsel %vm100_vm7, %v363_v47, -1e+30  ;;  %v561_v56 = vmax.f32 %v555_v27, %v346_v45  ;;  %v562_v57 = vmax.f32 %v556_v32, %v347_v46  ;;  %v374_v58 = vld [vmem:[#allocation2 + $0x9] sm:$0xff]  ;;  %v375_v10 = vld [vmem:[#allocation2 + $0x11] sm:$0xff] }
  0x22   :  { %v354_v60 = vmax.f32 %v348_v50, %v85_v33  ;;  %v103_v62 = vmax.f32 %v95_v48, %v364_v54  ;;  %v104_v63 = vmax.f32 %v96_v49, %v365_v55  ;;  %v109_v4 = vsel %vm107_vm9, %v105_v52, -1e+30  ;;  %v4172_v16 = vld [vmem:[#allocation5 + $0xf0] sm:$0xff]   ;;  %v4174_v30 = vld [vmem:[#allocation5 + $0xe8] sm:$0xff]   ;;  %v4178_v46 = vld [vmem:[#allocation5 + $0xd8] sm:$0xff]  }
  0x23   :  { %v355_v61 = vmax.f32 %v349_v51, %v86_v34  ;;  %v567_v2 = vmax.f32 %v561_v56, %v85_v33  ;;  %v568_v3 = vmax.f32 %v562_v57, %v86_v34  ;;  %v110_v5 = vsel %vm108_vm10, %v106_v53, -1e+30  ;;  %v4169_v48 = vld [vmem:[#allocation5 + $0xb8] sm:$0xff]   ;;  %v4171_v57 = vld [vmem:[#allocation5 + $0xb0] sm:$0xff]  }
  0x24   :  { %3678 = vmatpush3.bf16.msra.mxu1 %v4163_v21  ;;  %3658 = vmatpush3.bf16.msra.mxu0 %v4164_v22  ;;  %v360_v6 = vmax.f32 %v354_v60, %v93_v39  ;;  %v111_v8 = vmax.f32 %v103_v62, %v109_v4  ;;  %v112_v9 = vmax.f32 %v104_v63, %v110_v5  ;;  %v378_v15 = vsel %vm376_vm11, %v374_v58, -1e+30 }
  0x25   :  { %3679 = vmatprep.subr.bf16.mxu1 %v4379_v0  ;;  %3659 = vmatprep.subr.bf16.mxu0 %v4379_v0  ;;  %v361_v7 = vmax.f32 %v355_v61, %v94_v40  ;;  %v573_v11 = vmax.f32 %v567_v2, %v93_v39  ;;  %v574_v13 = vmax.f32 %v568_v3, %v94_v40  ;;  %v379_v19 = vsel %vm377_vm12, %v375_v10, -1e+30  ;;  %v4182_v3 = vld [vmem:[#allocation5 + $0xc8] sm:$0xff]   ;;  %v4175_v10 = vld [vmem:[#allocation5 + $0xa0] sm:$0xff]  }
  0x26   :  { %v366_v17 = vmax.f32 %v360_v6, %v364_v54  ;;  %121 = vst [vmem:[#allocation3 + $0x18] sm:$0xff] %v111_v8  ;;  %122 = vst [vmem:[#allocation3 + $0x20] sm:$0xff] %v112_v9  ;;  %v126_v27 = vmax.f32 %v112_v9, %v111_v8 }
  0x27   :  { %v367_v18 = vmax.f32 %v361_v7, %v365_v55  ;;  %v579_v20 = vmax.f32 %v573_v11, %v364_v54  ;;  %v580_v21 = vmax.f32 %v574_v13, %v365_v55  ;;  %v4180_v55 = vld [vmem:[#allocation5 + $0xd0] sm:$0xff]   ;;  %v4184_v11 = vld [vmem:[#allocation5 + $0xc0] sm:$0xff]  }
  0x28   :  { %3680 = vmatpush3.bf16.msra.mxu1 %v4165_v25  ;;  %3660 = vmatpush3.bf16.msra.mxu0 %v4166_v26  ;;  %v372_v22 = vmax.f32 %v366_v17, %v109_v4  ;;  %v125_v26 = vmax.f32 %v111_v8, -1e+30 }
  0x29   :  { %3681 = vmatprep.subr.bf16.mxu1 %v4379_v0  ;;  %3661 = vmatprep.subr.bf16.mxu0 %v4379_v0  ;;  %v373_v23 = vmax.f32 %v367_v18, %v110_v5  ;;  %v584_v24 = vmax.f32 %v579_v20, %v109_v4  ;;  %v585_v25 = vmax.f32 %v580_v21, %v110_v5  ;;  %v4173_v4 = vld [vmem:[#allocation5 + $0xa8] sm:$0xff]   ;;  %v4177_v21 = vld [vmem:[#allocation5 + $0x98] sm:$0xff]  }
  0x2b   :  { %v381_v29 = vmax.f32 %v373_v23, %v379_v19  ;;  %v589_v31 = vmax.f32 %v584_v24, %v378_v15  ;;  %v590_v32 = vmax.f32 %v585_v25, %v379_v19 }
  0x2c   :  { %3682 = vmatpush3.bf16.msra.mxu1 %v4167_v28  ;;  %3662 = vmatpush3.bf16.msra.mxu0 %v4168_v43  ;;  %v380_v28 = vmax.f32 %v372_v22, %v378_v15 }
  0x2d   :  { %3707 = vmatprep.subr.bf16.mxu1 %v4379_v0  ;;  %3687 = vmatprep.subr.bf16.mxu0 %v4379_v0  ;;  %v4505_v34 = vmax.f32 %v381_v29, -1e+30  ;;  %v127_v35 = vld [vmem:[#allocation3 + $0x14] sm:$0xff]  ;;  %v128_v36 = vld [vmem:[#allocation3 + $0x1c] sm:$0xff]  ;;  %v131_v37 = vld [vmem:[#allocation3 + $0x24] sm:$0xff] }
  0x2e   :  { %v4503_v33 = vmax.f32 %v380_v28, -1e+30  ;;  %v594_v38 = vmax.f32 %v589_v31, -1e+30  ;;  %v129_v39 = vmax.f32 %v125_v26, %v127_v35  ;;  %v130_v40 = vmax.f32 %v126_v27, %v128_v36  ;;  %391 = vst [vmem:[#allocation3 + $0x10] sm:$0xff] %v4380_v1  ;;  %394 = vst [vmem:[#allocation3 + $0x28] sm:$0xff] %v4380_v1 }
  0x2f   :  { %3684 = vmatmul.mubr.bf16.vlgmr.msra.gmra.mxu1 %v64_v44  ;;  %398 = vst [vmem:[#allocation3 + $0x20] sm:$0xff] %v4505_v34  ;;  %v595_v41 = vmax.f32 %v590_v32, -1e+30  ;;  %v402_v53 = vmax.f32 %v4505_v34, -1e+30 }
  0x30   :  { %3708 = vmatpush3.bf16.msra.mxu1 %v4170_v59  ;;  %3723 = vmatprep.mubr.msk.bf16.mxu1 %vm4381_vm0, %v4379_v0  ;;  %397 = vst [vmem:[#allocation3 + $0x18] sm:$0xff] %v4503_v33  ;;  %v601_v43 = vmax.f32 %v594_v38, -1e+30  ;;  %v132_v44 = vmax.f32 %v129_v39, %v128_v36  ;;  %v133_v45 = vmax.f32 %v130_v40, %v131_v37  ;;  %v401_v49 = vmax.f32 %v4503_v33, -1e+30  ;;  %v4181_v39 = vld [vmem:[#allocation5 + $0x88] sm:$0xff]  }
  0x31   :  { %3709 = vmatprep.subr.bf16.mxu1 %v4379_v0  ;;  %v602_v47 = vmax.f32 %v595_v41, -1e+30 }
  0x32   :  { %v136_v50 = vmax.f32 %v132_v44, %v112_v9  ;;  %v137_v51 = vmax.f32 %v133_v45, -1e+30  ;;  %v4513_v52 = vmax.f32 %v601_v43, -1e+30 }
  0x33   :  { %v4517_v56 = vmax.f32 %v602_v47, -1e+30 }
  0x34   :  { %3710 = vmatpush3.bf16.msra.mxu1 %v4172_v16  ;;  %v138_v54 = vpack.c.bf16 %v137_v51, %v136_v50  ;;  %v623_v5 = vmax.f32 %v4513_v52, -1e+30 }
  0x35   :  { %3711 = vmatprep.subr.bf16.mxu1 %v4379_v0  ;;  %v403_v58 = vld [vmem:[#allocation3 + $0xc] sm:$0xff]  ;;  %v624_v8 = vmax.f32 %v4517_v56, -1e+30 }
  0x36   :  { %3664 = vmatmul.mubr.bf16.vlgmr.msra.gmra.mxu0 %v138_v54  ;;  %v405_v61 = vmax.f32 %v401_v49, %v403_v58  ;;  %v4519_v63 = vld [vmem:[#allocation3 + $0x24] sm:$0xff]  ;;  %v4521_v2 = vld [vmem:[#allocation3 + $0x2c] sm:$0xff]  ;;  %612 = vst [vmem:[#allocation3 + $0x8] sm:$0xff] %v4380_v1 }
  0x37   :  { %v404_v59 = vld [vmem:[#allocation3 + $0x14] sm:$0xff]  ;;  %v410_v60 = vld [vmem:[#allocation3 + $0x1c] sm:$0xff]  ;;  %3688 = vmatpush3.bf16.msra.mxu0 %v4169_v48  ;;  %616 = vst [vmem:[#allocation3 + $0x28] sm:$0xff] %v4380_v1  ;;  %617 = vst [vmem:[#allocation3 + $0x30] sm:$0xff] %v4380_v1  ;;  %3703 = vmatprep.mubr.msk.bf16.mxu0 %vm4381_vm0, %v4379_v0 }
  0x38   :  { %3712 = vmatpush3.bf16.msra.mxu1 %v4174_v30  ;;  %v406_v62 = vmax.f32 %v402_v53, %v404_v59  ;;  %613 = vst [vmem:[#allocation3 + $0x10] sm:$0xff] %v4380_v1  ;;  %619 = vst [vmem:[#allocation3 + $0x18] sm:$0xff] %v4513_v52  ;;  %3689 = vmatprep.subr.bf16.mxu0 %v4379_v0  ;;  %v408_v6 = vmax.f32 %v405_v61, -1e+30  ;;  %v4179_v30 = vld [vmem:[#allocation5 + $0x90] sm:$0xff]   ;;  %v4188_v61 = vld [vmem:[#allocation5 + $0x120] sm:$0xff]  }
  0x39   :  { %3713 = vmatprep.subr.bf16.mxu1 %v4379_v0  ;;  %620 = vst [vmem:[#allocation3 + $0x20] sm:$0xff] %v4517_v56  ;;  %v4186_v58 = vld [vmem:[#allocation5 + $0x130] sm:$0xff]  }
  0x3a   :  { %v409_v7 = vmax.f32 %v406_v62, %v4503_v33  ;;  %v411_v13 = vmax.f32 %v408_v6, %v404_v59  ;;  %v4556_v59 = vld [vmem:[#allocation4] sm:$0xff]  ;;  %v4189_v62 = vld [vmem:[#allocation5 + $0x118] sm:$0xff]  }
  0x3b   :  { %3690 = vmatpush3.bf16.msra.mxu0 %v4171_v57  ;;  %v4185_v57 = vld [vmem:[#allocation5 + $0x138] sm:$0xff]  }
  0x3c   :  { %3714 = vmatpush3.bf16.msra.mxu1 %v4176_v42  ;;  %3691 = vmatprep.subr.bf16.mxu0 %v4379_v0  ;;  %v412_v15 = vmax.f32 %v409_v7, %v410_v60  ;;  %v414_v23 = vmax.f32 %v411_v13, %v410_v60  ;;  %v4187_v60 = vld [vmem:[#allocation5 + $0x128] sm:$0xff]  }
  0x3d   :  { %3715 = vmatprep.subr.bf16.mxu1 %v4379_v0  ;;  %v625_v1 = vld [vmem:[#allocation3 + $0x4] sm:$0xff] }
  0x3e   :  { %v627_v16 = vmax.f32 %v623_v5, %v625_v1  ;;  %v415_v24 = vmax.f32 %v412_v15, %v4519_v63  ;;  %v418_v31 = vmax.f32 %v414_v23, %v4505_v34  ;;  %v648_v36 = vld [vmem:[#allocation3 + $0x2c] sm:$0xff]  ;;  %v654_v44 = vld [vmem:[#allocation3 + $0x34] sm:$0xff] }
  0x3f   :  { %v626_v9 = vld [vmem:[#allocation3 + $0xc] sm:$0xff]  ;;  %3692 = vmatpush3.bf16.msra.mxu0 %v4173_v4  ;;  %v632_v18 = vld [vmem:[#allocation3 + $0x14] sm:$0xff] }
  0x40   :  { %3716 = vmatpush3.bf16.msra.mxu1 %v4178_v46  ;;  %v628_v17 = vmax.f32 %v624_v8, %v626_v9  ;;  %3693 = vmatprep.subr.bf16.mxu0 %v4379_v0  ;;  %v630_v19 = vmax.f32 %v627_v16, -1e+30  ;;  %v638_v22 = vld [vmem:[#allocation3 + $0x1c] sm:$0xff]  ;;  %v641_v27 = vld [vmem:[#allocation3 + $0x24] sm:$0xff]  ;;  %v419_v32 = vmax.f32 %v415_v24, -1e+30  ;;  %v421_v40 = vmax.f32 %v418_v31, %v4519_v63 }
  0x41   :  { %3717 = vmatprep.subr.bf16.mxu1 %v4379_v0  ;;  %v4183_v46 = vld [vmem:[#allocation5 + $0x80] sm:$0xff]   ;;  %v4191_v63 = vld [vmem:[#allocation5 + $0x108] sm:$0xff]   ;;  %v4195_v4 = vld [vmem:[#allocation5 + $0x1b0] sm:$0xff]  }
  0x42   :  { %v631_v20 = vmax.f32 %v628_v17, -1e+30  ;;  %v633_v25 = vmax.f32 %v630_v19, %v626_v9  ;;  %v422_v41 = vmax.f32 %v419_v32, %v4521_v2  ;;  %v424_v47 = vmax.f32 %v421_v40, -1e+30  ;;  %v4192_v2 = vld [vmem:[#allocation5 + $0x100] sm:$0xff]   ;;  %v4197_v5 = vld [vmem:[#allocation5 + $0x1a8] sm:$0xff]  }
  0x43   :  { %3694 = vmatpush3.bf16.msra.mxu0 %v4175_v10  ;;  %v3212_v19 = vld [vmem:[%s4905_s2] ss:$0 sm:$0xff]  ;;  %v4198_v40 = vld [vmem:[#allocation5 + $0x168] sm:$0xff]  }
  0x44   :  { %3718 = vmatpush3.bf16.msra.mxu1 %v4180_v55  ;;  %v634_v26 = vmax.f32 %v631_v20, %v632_v18  ;;  %3695 = vmatprep.subr.bf16.mxu0 %v4379_v0  ;;  %v636_v28 = vmax.f32 %v633_v25, -1e+30  ;;  %v425_v48 = vmax.f32 %v422_v41, -1e+30  ;;  %v4199_v41 = vld [vmem:[#allocation5 + $0x1a0] sm:$0xff]  }
  0x45   :  { %3719 = vmatprep.subr.bf16.mxu1 %v4379_v0 }
  0x46   :  { %v637_v29 = vmax.f32 %v634_v26, %v4513_v52  ;;  %v639_v33 = vmax.f32 %v636_v28, %v632_v18  ;;  %v426_v53 = vpack.c.bf16 %v425_v48, %v424_v47  ;;  %v4206_v47 = vld [vmem:[#allocation5 + $0x148] sm:$0xff]   ;;  %v4207_v48 = vld [vmem:[#allocation5 + $0x180] sm:$0xff]  }
  0x47   :  { %3696 = vmatpush3.bf16.msra.mxu0 %v4177_v21 }
  0x48   :  { %3720 = vmatpush3.bf16.msra.mxu1 %v4182_v3  ;;  %v640_v35 = vmax.f32 %v637_v29, %v638_v22  ;;  %3697 = vmatprep.subr.bf16.mxu0 %v4379_v0  ;;  %v642_v37 = vmax.f32 %v639_v33, %v638_v22  ;;  %v4193_v3 = vld [vmem:[#allocation5 + $0x1b8] sm:$0xff]  }
  0x49   :  { %3721 = vmatprep.subr.bf16.mxu1 %v4379_v0 }
  0x4a   :  { %v643_v38 = vmax.f32 %v640_v35, %v641_v27  ;;  %v646_v42 = vmax.f32 %v642_v37, %v4517_v56  ;;  %v4194_v37 = vld [vmem:[#allocation5 + $0x178] sm:$0xff]  }
  0x4b   :  { %3698 = vmatpush3.bf16.msra.mxu0 %v4179_v30 }
  0x4c   :  { %3722 = vmatpush3.bf16.msra.mxu1 %v4184_v11  ;;  %v647_v43 = vmax.f32 %v643_v38, -1e+30  ;;  %3699 = vmatprep.subr.bf16.mxu0 %v4379_v0  ;;  %v649_v34 = vmax.f32 %v646_v42, %v641_v27  ;;  %v4200_v42 = vld [vmem:[#allocation5 + $0x160] sm:$0xff]  }
  0x4d   :  { %3747 = vmatprep.subr.bf16.mxu1 %v4379_v0 }
  0x4e   :  { %v650_v45 = vmax.f32 %v647_v43, %v648_v36  ;;  %v652_v49 = vmax.f32 %v649_v34, -1e+30  ;;  %v4201_v43 = vld [vmem:[#allocation5 + $0x198] sm:$0xff]   ;;  %v4203_v34 = vld [vmem:[#allocation5 + $0x190] sm:$0xff]  }
  0x4f   :  { %3700 = vmatpush3.bf16.msra.mxu0 %v4181_v39  ;;  %v4196_v39 = vld [vmem:[#allocation5 + $0x170] sm:$0xff]  }
  0x50   :  { %v653_v50 = vmax.f32 %v650_v45, -1e+30  ;;  %3701 = vmatprep.subr.bf16.mxu0 %v4379_v0  ;;  %v655_v51 = vmax.f32 %v652_v49, %v648_v36  ;;  %v4204_v45 = vld [vmem:[#allocation5 + $0x150] sm:$0xff]   ;;  %v4208_v49 = vld [vmem:[#allocation5 + $0x140] sm:$0xff]  }
  0x52   :  { %v656_v52 = vmax.f32 %v653_v50, %v654_v44  ;;  %v659_v54 = vmax.f32 %v655_v51, -1e+30  ;;  %v4202_v44 = vld [vmem:[#allocation5 + $0x158] sm:$0xff]   ;;  %v3213_v50 = vld [vmem:[%s4905_s2 + $0x1] ss:$0 sm:$0xff] }
  0x53   :  { %3702 = vmatpush3.bf16.msra.mxu0 %v4183_v46  ;;  %v4205_v46 = vld [vmem:[#allocation5 + $0x188] sm:$0xff]  }
  0x54   :  { %v660_v55 = vmax.f32 %v656_v52, -1e+30  ;;  %3727 = vmatprep.subr.bf16.mxu0 %v4379_v0 }
  0x56   :  { %v661_v56 = vpack.c.bf16 %v660_v55, %v659_v54  ;;  %3704 = vmatmul.mubr.bf16.vlgmr.msra.gmra.mxu0 %v426_v53 }
  0x57   :  { %3743 = vmatprep.mubr.msk.bf16.mxu0 %vm4381_vm0, %v4379_v0  ;;  %3728 = vmatpush3.bf16.msra.mxu0 %v4185_v57 }
  0x58   :  { %3724 = vmatmul.mubr.bf16.vlgmr.msra.gmra.mxu1 %v661_v56  ;;  %3729 = vmatprep.subr.bf16.mxu0 %v4556_v59 }
  0x59   :  { %3763 = vmatprep.mubr.msk.bf16.mxu1 %vm4381_vm0, %v4379_v0  ;;  %v4190_v0 = vld [vmem:[#allocation5 + $0x110] sm:$0xff]   ;;  %3748 = vmatpush3.bf16.msra.mxu1 %v4193_v3  ;;  %v4210_v3 = vld [vmem:[#allocation5 + $0x238] sm:$0xff]  }
  0x5a   :  { %3749 = vmatprep.subr.bf16.mxu1 %v4556_v59 }
  0x5b   :  { %3730 = vmatpush3.bf16.msra.mxu0 %v4186_v58 }
  0x5c   :  { %3731 = vmatprep.subr.bf16.mxu0 %v4556_v59 }
  0x5d   :  { %3750 = vmatpush3.bf16.msra.mxu1 %v4195_v4 }
  0x5e   :  { %3751 = vmatprep.subr.bf16.mxu1 %v4556_v59 }
  0x5f   :  { %3732 = vmatpush3.bf16.msra.mxu0 %v4187_v60 }
  0x60   :  { %3733 = vmatprep.subr.bf16.mxu0 %v4556_v59 }
  0x61   :  { %3752 = vmatpush3.bf16.msra.mxu1 %v4197_v5 }
  0x62   :  { %3753 = vmatprep.subr.bf16.mxu1 %v4556_v59 }
  0x63   :  { %3734 = vmatpush3.bf16.msra.mxu0 %v4188_v61 }
  0x64   :  { %3735 = vmatprep.subr.bf16.mxu0 %v4556_v59 }
  0x65   :  { %3754 = vmatpush3.bf16.msra.mxu1 %v4199_v41  ;;  %v4230_v41 = vld [vmem:[#allocation5 + $0x2a8] sm:$0xff]  }
  0x66   :  { %3755 = vmatprep.subr.bf16.mxu1 %v4556_v59 }
  0x67   :  { %3736 = vmatpush3.bf16.msra.mxu0 %v4189_v62 }
  0x68   :  { %3737 = vmatprep.subr.bf16.mxu0 %v4556_v59 }
  0x69   :  { %3756 = vmatpush3.bf16.msra.mxu1 %v4201_v43  ;;  %v4232_v43 = vld [vmem:[#allocation5 + $0x2a0] sm:$0xff]  }
  0x6a   :  { %3757 = vmatprep.subr.bf16.mxu1 %v4556_v59 }
  0x6b   :  { %3738 = vmatpush3.bf16.msra.mxu0 %v4190_v0 }
  0x6c   :  { %3739 = vmatprep.subr.bf16.mxu0 %v4556_v59 }
  0x6d   :  { %3758 = vmatpush3.bf16.msra.mxu1 %v4203_v34  ;;  %v4234_v34 = vld [vmem:[#allocation5 + $0x298] sm:$0xff]  }
  0x6e   :  { %3759 = vmatprep.subr.bf16.mxu1 %v4556_v59 }
  0x6f   :  { %3740 = vmatpush3.bf16.msra.mxu0 %v4191_v63  ;;  %v4341_v63 = vld [vmem:[#allocation5 + $0x5d8] sm:$0xff]  }
  0x70   :  { %3741 = vmatprep.subr.bf16.mxu0 %v4556_v59 }
  0x71   :  { %3760 = vmatpush3.bf16.msra.mxu1 %v4205_v46  ;;  %v4236_v46 = vld [vmem:[#allocation5 + $0x290] sm:$0xff]  }
  0x72   :  { %3761 = vmatprep.subr.bf16.mxu1 %v4556_v59 }
  0x73   :  { %3742 = vmatpush3.bf16.msra.mxu0 %v4192_v2  ;;  %v4209_v2 = vld [vmem:[#allocation5 + $0x1f8] sm:$0xff]  }
  0x74   :  { %3767 = vmatprep.subr.bf16.mxu0 %v4556_v59 }
  0x75   :  { %3762 = vmatpush3.bf16.msra.mxu1 %v4207_v48  ;;  %v4238_v48 = vld [vmem:[#allocation5 + $0x288] sm:$0xff]  }
  0x76   :  { %3787 = vmatprep.subr.bf16.mxu1 %v4556_v59 }
  0xef   :  { %v327_v6 = vpop.f32.mrf.mxu1 }
  0xf1   :  { %v3685_v7 = vpop.f32.mrf.mxu1 }
  0xf3   :  { %v330_v8 = vpop.f32.mrf.mxu1 }
  0xf5   :  { %v3686_v1 = vpop.f32.mrf.mxu1 }
  0xf6   :  { %v238_v9 = vpop.f32.mrf.mxu0 }
  0xf7   :  { %v328_v15 = vadd.f32 %v327_v6, %v238_v9 }
  0xf8   :  { %v3665_v10 = vpop.f32.mrf.mxu0 }
  0xfa   :  { %v241_v11 = vpop.f32.mrf.mxu0 }
  0xfb   :  { %v331_v22 = vadd.f32 %v330_v8, %v241_v11 }
  0xfc   :  { %v3666_v13 = vpop.f32.mrf.mxu0 }
 0x116   :  { %v526_v16 = vpop.f32.mrf.mxu0 }
 0x117   :  { %v533_v18 = vadd.f32 %v526_v16, %v328_v15 }
 0x118   :  { %v761_v17 = vpop.f32.mrf.mxu1  ;;  %v3705_v20 = vpop.f32.mrf.mxu0 }
 0x119   :  { %v768_v23 = vadd.f32 %v761_v17, %v533_v18  ;;  %v4211_v20 = vld [vmem:[#allocation5 + $0x1f0] sm:$0xff]  }
 0x11a   :  { %v3725_v21 = vpop.f32.mrf.mxu1  ;;  %v529_v24 = vpop.f32.mrf.mxu0 }
 0x11b   :  { %v775_v26 = vadd.f32 %v3212_v19, %v768_v23  ;;  %v534_v27 = vadd.f32 %v529_v24, %v331_v22  ;;  %v4212_v21 = vld [vmem:[#allocation5 + $0x230] sm:$0xff]   ;;  %v4213_v22 = vld [vmem:[#allocation5 + $0x1e8] sm:$0xff]   ;;  %v4215_v24 = vld [vmem:[#allocation5 + $0x1e0] sm:$0xff]  }
 0x11c   :  { %v764_v25 = vpop.f32.mrf.mxu1  ;;  %v3706_v28 = vpop.f32.mrf.mxu0  ;;  %v4214_v23 = vld [vmem:[#allocation5 + $0x228] sm:$0xff]  }
 0x11d   :  { %v769_v30 = vadd.f32 %v764_v25, %v534_v27  ;;  %v777_v31 = vmul.f32 0.1, %v775_v26  ;;  %v4216_v25 = vld [vmem:[#allocation5 + $0x220] sm:$0xff]   ;;  %v4218_v27 = vld [vmem:[#allocation5 + $0x218] sm:$0xff]   ;;  %v4219_v28 = vld [vmem:[#allocation5 + $0x1d0] sm:$0xff]  }
 0x11e   :  { %v3726_v29 = vpop.f32.mrf.mxu1 }
 0x11f   :  { %v776_v32 = vadd.f32 %v3212_v19, %v769_v30  ;;  %v779_v35 = vmax.f32 %v775_v26, %v777_v31  ;;  %v4217_v26 = vld [vmem:[#allocation5 + $0x1d8] sm:$0xff]   ;;  %v4220_v29 = vld [vmem:[#allocation5 + $0x210] sm:$0xff]   ;;  %v4221_v30 = vld [vmem:[#allocation5 + $0x1c8] sm:$0xff]  }
 0x120   :  { %v4222_v31 = vld [vmem:[#allocation5 + $0x208] sm:$0xff]  }
 0x121   :  { %v778_v33 = vmul.f32 0.1, %v776_v32 }
 0x123   :  { %v780_v36 = vmax.f32 %v776_v32, %v778_v33  ;;  %v4223_v32 = vld [vmem:[#allocation5 + $0x1c0] sm:$0xff]  }
 0x124   :  { %v4224_v33 = vld [vmem:[#allocation5 + $0x200] sm:$0xff]  }
 0x125   :  { %v781_v38 = vpack.c.bf16 %v780_v36, %v779_v35  ;;  %v4225_v36 = vld [vmem:[#allocation5 + $0x278] sm:$0xff]  }
 0x127   :  { %3744 = vmatmul.mubr.bf16.vlgmr.msra.gmra.mxu0 %v781_v38 }
 0x128   :  { %3768 = vmatpush3.bf16.msra.mxu0 %v4194_v37  ;;  %3783 = vmatprep.mubr.msk.bf16.mxu0 %vm4381_vm0, %v4556_v59  ;;  %v4226_v37 = vld [vmem:[#allocation5 + $0x2b8] sm:$0xff]  }
 0x129   :  { %3769 = vmatprep.subr.bf16.mxu0 %v4556_v59 }
 0x12c   :  { %3770 = vmatpush3.bf16.msra.mxu0 %v4196_v39 }
 0x12d   :  { %3771 = vmatprep.subr.bf16.mxu0 %v4556_v59 }
 0x130   :  { %3772 = vmatpush3.bf16.msra.mxu0 %v4198_v40  ;;  %v4229_v40 = vld [vmem:[#allocation5 + $0x268] sm:$0xff]  }
 0x131   :  { %3773 = vmatprep.subr.bf16.mxu0 %v4556_v59 }
 0x134   :  { %3774 = vmatpush3.bf16.msra.mxu0 %v4200_v42  ;;  %v4231_v42 = vld [vmem:[#allocation5 + $0x260] sm:$0xff]  }
 0x135   :  { %3775 = vmatprep.subr.bf16.mxu0 %v4556_v59 }
 0x138   :  { %3776 = vmatpush3.bf16.msra.mxu0 %v4202_v44  ;;  %v4233_v44 = vld [vmem:[#allocation5 + $0x258] sm:$0xff]  }
 0x139   :  { %3777 = vmatprep.subr.bf16.mxu0 %v4556_v59 }
 0x13c   :  { %3778 = vmatpush3.bf16.msra.mxu0 %v4204_v45  ;;  %v4235_v45 = vld [vmem:[#allocation5 + $0x250] sm:$0xff]  }
 0x13d   :  { %3779 = vmatprep.subr.bf16.mxu0 %v4556_v59 }
 0x140   :  { %3780 = vmatpush3.bf16.msra.mxu0 %v4206_v47  ;;  %v4237_v47 = vld [vmem:[#allocation5 + $0x248] sm:$0xff]  }
 0x141   :  { %3781 = vmatprep.subr.bf16.mxu0 %v4556_v59 }
 0x144   :  { %3782 = vmatpush3.bf16.msra.mxu0 %v4208_v49  ;;  %v4239_v49 = vld [vmem:[#allocation5 + $0x240] sm:$0xff]  }
 0x145   :  { %3807 = vmatprep.subr.bf16.mxu0 %v4556_v59 }
 0x1e7   :  { %v886_v51 = vpop.f32.mrf.mxu0 }
 0x1e8   :  { %v887_v52 = vadd.f32 %v3213_v50, %v886_v51  ;;  %v4241_v51 = vld [vmem:[#allocation5 + $0x2f8] sm:$0xff]  }
 0x1e9   :  { %v3745_v53 = vpop.f32.mrf.mxu0 }
 0x1ea   :  { %v893_v54 = vmul.f32 0.1, %v887_v52 }
 0x1eb   :  { %v889_v55 = vpop.f32.mrf.mxu0 }
 0x1ec   :  { %v4590_v56 = vmax.f32 %v887_v52, %v893_v54  ;;  %v890_v57 = vadd.f32 %v3213_v50, %v889_v55  ;;  %v4240_v50 = vld [vmem:[#allocation5 + $0x280] sm:$0xff]   ;;  %v4242_v52 = vld [vmem:[#allocation5 + $0x338] sm:$0xff]   ;;  %v4243_v54 = vld [vmem:[#allocation5 + $0x2f0] sm:$0xff]  }
 0x1ed   :  { %v3746_v58 = vpop.f32.mrf.mxu0  ;;  %v4244_v55 = vld [vmem:[#allocation5 + $0x330] sm:$0xff]  }
 0x1ee   :  { %901 = vst [vmem:[#allocation4 + $0x5] sm:$0xff] %v4590_v56  ;;  %v894_v60 = vmul.f32 0.1, %v890_v57  ;;  %v4247_v58 = vld [vmem:[#allocation5 + $0x2e0] sm:$0xff]  }
 0x1f0   :  { %v4593_v61 = vmax.f32 %v890_v57, %v894_v60  ;;  %v4246_v57 = vld [vmem:[#allocation5 + $0x328] sm:$0xff]   ;;  %v4248_v60 = vld [vmem:[#allocation5 + $0x320] sm:$0xff]  }
 0x1f2   :  { %902 = vst [vmem:[#allocation4 + $0xd] sm:$0xff] %v4593_v61  ;;  %v1351_v62 = vpack.c.bf16 %v4593_v61, %v4590_v56  ;;  %v4245_v56 = vld [vmem:[#allocation5 + $0x2e8] sm:$0xff]   ;;  %v4249_v61 = vld [vmem:[#allocation5 + $0x2d8] sm:$0xff]  }
 0x1f5   :  { %v925_v0 = vld [vmem:[#allocation4 + $0x1] sm:$0xff] }
 0x1f6   :  { %v903_v4 = vld [vmem:[#allocation4] sm:$0xff] }
 0x1f7   :  { %v4606_v5 = vld [vmem:[#allocation4 + $0x2] sm:$0xff] }
 0x1f8   :  { %v4608_v6 = vld [vmem:[#allocation4 + $0x4] sm:$0xff] }
 0x1f9   :  { %v4610_v7 = vld [vmem:[#allocation4 + $0x9] sm:$0xff]  ;;  %v4627_v17 = vld [vmem:[#allocation4 + $0x11] sm:$0xff] }
 0x1fa   :  { %v4612_v8 = vld [vmem:[#allocation4 + $0x8] sm:$0xff]  ;;  %v927_v9 = vpack.c.bf16 %v4610_v7, %v925_v0  ;;  %v4625_v16 = vld [vmem:[#allocation4 + $0x10] sm:$0xff] }
 0x1fb   :  { %v4614_v1 = vld [vmem:[#allocation4 + $0xa] sm:$0xff]  ;;  %v3239_v10 = vpack.c.bf16 %v4612_v8, %v903_v4  ;;  %v4629_v18 = vld [vmem:[#allocation4 + $0x12] sm:$0xff]  ;;  %v3291_v19 = vpack.c.bf16 %v4625_v16, %v4612_v8  ;;  %v4260_v8 = vld [vmem:[#allocation5 + $0x360] sm:$0xff]  }
 0x1fc   :  { %v4618_v11 = vld [vmem:[#allocation4 + $0xc] sm:$0xff]  ;;  %3764 = vmatmul.mubr.bf16.vlgmr.msra.gmra.mxu1 %v927_v9  ;;  %2040 = vst [vmem:[#allocation4 + $0x18] sm:$0x3] %v4556_v59  ;;  %v3250_v38 = vpack.c.bf16 %v4614_v1, %v4606_v5  ;;  %v4255_v5 = vld [vmem:[#allocation5 + $0x2c0] sm:$0xff]   ;;  %v4257_v9 = vld [vmem:[#allocation5 + $0x378] sm:$0xff]  }
 0x1fd   :  { %v4620_v13 = vld [vmem:[#allocation4 + $0x6] sm:$0xff]  ;;  %v4622_v15 = vld [vmem:[#allocation4 + $0xe] sm:$0xff]  ;;  %3784 = vmatmul.mubr.msk.bf16.vlgmr.msra.gmra.mxu0 %vm4602_vm13, %v3239_v10  ;;  %3788 = vmatpush3.bf16.msra.mxu1 %v4209_v2  ;;  %v3261_v39 = vpack.c.bf16 %v4618_v11, %v4608_v6  ;;  %v1688_v10 = vpack.c.bf16 %v4627_v17, %v4610_v7 }
 0x1fe   :  { %2037 = vst [vmem:[#allocation4] sm:$0xff] %v4556_v59  ;;  %2038 = vst [vmem:[#allocation4 + $0x8] sm:$0xff] %v4556_v59  ;;  %3808 = vmatpush3.bf16.msra.mxu0 %v4210_v3  ;;  %3789 = vmatprep.subr.bf16.mxu1 %v4556_v59  ;;  %v3280_v53 = vpack.c.bf16 %v4622_v15, %v4620_v13  ;;  %v4251_v0 = vld [vmem:[#allocation5 + $0x2d0] sm:$0xff]   ;;  %v4253_v3 = vld [vmem:[#allocation5 + $0x2c8] sm:$0xff]  }
 0x1ff   :  { %2039 = vst [vmem:[#allocation4 + $0x10] sm:$0xff] %v4556_v59  ;;  %3809 = vmatprep.subr.bf16.mxu0 %v4556_v59  ;;  %3803 = vmatprep.mubr.msk.bf16.mxu1 %vm4381_vm0, %v4556_v59  ;;  %v4252_v2 = vld [vmem:[#allocation5 + $0x310] sm:$0xff]   ;;  %v4254_v4 = vld [vmem:[#allocation5 + $0x308] sm:$0xff]   ;;  %v4256_v6 = vld [vmem:[#allocation5 + $0x300] sm:$0xff]  }
 0x200   :  { %3823 = vmatprep.mubr.msk.bf16.mxu0 %vm4381_vm0, %v4556_v59  ;;  %v4258_v11 = vld [vmem:[#allocation5 + $0x370] sm:$0xff]   ;;  %v4259_v7 = vld [vmem:[#allocation5 + $0x368] sm:$0xff]   ;;  %v4261_v13 = vld [vmem:[#allocation5 + $0x358] sm:$0xff]  }
 0x201   :  { %3790 = vmatpush3.bf16.msra.mxu1 %v4211_v20  ;;  %v4262_v15 = vld [vmem:[#allocation5 + $0x350] sm:$0xff]   ;;  %v4263_v16 = vld [vmem:[#allocation5 + $0x348] sm:$0xff]   ;;  %v4264_v17 = vld [vmem:[#allocation5 + $0x340] sm:$0xff]  }
 0x202   :  { %3810 = vmatpush3.bf16.msra.mxu0 %v4212_v21  ;;  %3791 = vmatprep.subr.bf16.mxu1 %v4556_v59  ;;  %v4265_v20 = vld [vmem:[#allocation5 + $0x3b8] sm:$0xff]   ;;  %v4266_v21 = vld [vmem:[#allocation5 + $0x3b0] sm:$0xff]  }
 0x203   :  { %3811 = vmatprep.subr.bf16.mxu0 %v4556_v59 }
 0x205   :  { %3792 = vmatpush3.bf16.msra.mxu1 %v4213_v22  ;;  %v4267_v22 = vld [vmem:[#allocation5 + $0x3a8] sm:$0xff]  }
 0x206   :  { %3812 = vmatpush3.bf16.msra.mxu0 %v4214_v23  ;;  %3793 = vmatprep.subr.bf16.mxu1 %v4556_v59  ;;  %v4268_v23 = vld [vmem:[#allocation5 + $0x3a0] sm:$0xff]  }
 0x207   :  { %3813 = vmatprep.subr.bf16.mxu0 %v4556_v59 }
 0x209   :  { %3794 = vmatpush3.bf16.msra.mxu1 %v4215_v24 }
 0x20a   :  { %3814 = vmatpush3.bf16.msra.mxu0 %v4216_v25  ;;  %3795 = vmatprep.subr.bf16.mxu1 %v4556_v59 }
 0x20b   :  { %3815 = vmatprep.subr.bf16.mxu0 %v4556_v59 }
 0x20d   :  { %3796 = vmatpush3.bf16.msra.mxu1 %v4217_v26 }
 0x20e   :  { %3816 = vmatpush3.bf16.msra.mxu0 %v4218_v27  ;;  %3797 = vmatprep.subr.bf16.mxu1 %v4556_v59 }
 0x20f   :  { %3817 = vmatprep.subr.bf16.mxu0 %v4556_v59 }
 0x211   :  { %3798 = vmatpush3.bf16.msra.mxu1 %v4219_v28  ;;  %v4270_v28 = vld [vmem:[#allocation5 + $0x390] sm:$0xff]  }
 0x212   :  { %3818 = vmatpush3.bf16.msra.mxu0 %v4220_v29  ;;  %3799 = vmatprep.subr.bf16.mxu1 %v4556_v59 }
 0x213   :  { %3819 = vmatprep.subr.bf16.mxu0 %v4556_v59 }
 0x215   :  { %3800 = vmatpush3.bf16.msra.mxu1 %v4221_v30 }
 0x216   :  { %3820 = vmatpush3.bf16.msra.mxu0 %v4222_v31  ;;  %3801 = vmatprep.subr.bf16.mxu1 %v4556_v59 }
 0x217   :  { %3821 = vmatprep.subr.bf16.mxu0 %v4556_v59 }
 0x219   :  { %3802 = vmatpush3.bf16.msra.mxu1 %v4223_v32 }
 0x21a   :  { %3822 = vmatpush3.bf16.msra.mxu0 %v4224_v33  ;;  %3827 = vmatprep.subr.bf16.mxu1 %v4556_v59 }
 0x21b   :  { %3847 = vmatprep.subr.bf16.mxu0 %v4556_v59 }
 0x21c   :  { %3804 = vmatmul.mubr.msk.bf16.vlgmr.msra.gmra.mxu1 %vm4660_vm14, %v3250_v38  ;;  %v4273_v38 = vld [vmem:[#allocation5 + $0x438] sm:$0xff]  }
 0x21d   :  { %3824 = vmatmul.mubr.msk.bf16.vlgmr.msra.gmra.mxu0 %vm4602_vm13, %v3261_v39  ;;  %3828 = vmatpush3.bf16.msra.mxu1 %v4225_v36  ;;  %v4271_v36 = vld [vmem:[#allocation5 + $0x388] sm:$0xff]   ;;  %v4275_v39 = vld [vmem:[#allocation5 + $0x430] sm:$0xff]  }
 0x21e   :  { %3848 = vmatpush3.bf16.msra.mxu0 %v4226_v37  ;;  %3829 = vmatprep.subr.bf16.mxu1 %v4556_v59  ;;  %v4272_v37 = vld [vmem:[#allocation5 + $0x380] sm:$0xff]  }
 0x21f   :  { %3849 = vmatprep.subr.bf16.mxu0 %v4556_v59  ;;  %3843 = vmatprep.mubr.msk.bf16.mxu1 %vm4381_vm0, %v4556_v59 }
 0x220   :  { %3863 = vmatprep.mubr.msk.bf16.mxu0 %vm4381_vm0, %v4556_v59 }
 0x221   :  { %3830 = vmatpush3.bf16.msra.mxu1 %v4227_v12  ;;  %v4277_v12 = vld [vmem:[#allocation5 + $0x428] sm:$0xff]  }
 0x222   :  { %3850 = vmatpush3.bf16.msra.mxu0 %v4228_v14  ;;  %3831 = vmatprep.subr.bf16.mxu1 %v4556_v59 }
 0x223   :  { %3851 = vmatprep.subr.bf16.mxu0 %v4556_v59 }
 0x225   :  { %3832 = vmatpush3.bf16.msra.mxu1 %v4229_v40 }
 0x226   :  { %3852 = vmatpush3.bf16.msra.mxu0 %v4230_v41  ;;  %3833 = vmatprep.subr.bf16.mxu1 %v4556_v59 }
 0x227   :  { %3853 = vmatprep.subr.bf16.mxu0 %v4556_v59 }
 0x229   :  { %3834 = vmatpush3.bf16.msra.mxu1 %v4231_v42 }
 0x22a   :  { %3854 = vmatpush3.bf16.msra.mxu0 %v4232_v43  ;;  %3835 = vmatprep.subr.bf16.mxu1 %v4556_v59 }
 0x22b   :  { %3855 = vmatprep.subr.bf16.mxu0 %v4556_v59 }
 0x22d   :  { %3836 = vmatpush3.bf16.msra.mxu1 %v4233_v44 }
 0x22e   :  { %3856 = vmatpush3.bf16.msra.mxu0 %v4234_v34  ;;  %3837 = vmatprep.subr.bf16.mxu1 %v4556_v59 }
 0x22f   :  { %3857 = vmatprep.subr.bf16.mxu0 %v4556_v59 }
 0x231   :  { %3838 = vmatpush3.bf16.msra.mxu1 %v4235_v45 }
 0x232   :  { %3858 = vmatpush3.bf16.msra.mxu0 %v4236_v46  ;;  %3839 = vmatprep.subr.bf16.mxu1 %v4556_v59 }
 0x233   :  { %3859 = vmatprep.subr.bf16.mxu0 %v4556_v59 }
 0x235   :  { %3840 = vmatpush3.bf16.msra.mxu1 %v4237_v47 }
 0x236   :  { %3860 = vmatpush3.bf16.msra.mxu0 %v4238_v48  ;;  %3841 = vmatprep.subr.bf16.mxu1 %v4556_v59 }
 0x237   :  { %3861 = vmatprep.subr.bf16.mxu0 %v4556_v59 }
 0x239   :  { %3842 = vmatpush3.bf16.msra.mxu1 %v4239_v49 }
 0x23a   :  { %3862 = vmatpush3.bf16.msra.mxu0 %v4240_v50  ;;  %3867 = vmatprep.subr.bf16.mxu1 %v4556_v59 }
 0x23b   :  { %3887 = vmatprep.subr.bf16.mxu0 %v4556_v59 }
 0x23c   :  { %3844 = vmatmul.mubr.bf16.vlgmr.msra.gmra.mxu1 %v1351_v62  ;;  %v4250_v62 = vld [vmem:[#allocation5 + $0x318] sm:$0xff]  }
 0x23d   :  { %3864 = vmatmul.mubr.msk.bf16.vlgmr.msra.gmra.mxu0 %vm4660_vm14, %v3280_v53  ;;  %3868 = vmatpush3.bf16.msra.mxu1 %v4241_v51 }
 0x23e   :  { %3888 = vmatpush3.bf16.msra.mxu0 %v4242_v52  ;;  %3869 = vmatprep.subr.bf16.mxu1 %v4556_v59 }
 0x23f   :  { %3889 = vmatprep.subr.bf16.mxu0 %v4556_v59  ;;  %3883 = vmatprep.mubr.msk.bf16.mxu1 %vm4381_vm0, %v4556_v59 }
 0x240   :  { %3903 = vmatprep.mubr.msk.bf16.mxu0 %vm4381_vm0, %v4556_v59 }
 0x241   :  { %3870 = vmatpush3.bf16.msra.mxu1 %v4243_v54 }
 0x242   :  { %3890 = vmatpush3.bf16.msra.mxu0 %v4244_v55  ;;  %3871 = vmatprep.subr.bf16.mxu1 %v4556_v59 }
 0x243   :  { %3891 = vmatprep.subr.bf16.mxu0 %v4556_v59 }
 0x245   :  { %3872 = vmatpush3.bf16.msra.mxu1 %v4245_v56 }
 0x246   :  { %3892 = vmatpush3.bf16.msra.mxu0 %v4246_v57  ;;  %3873 = vmatprep.subr.bf16.mxu1 %v4556_v59 }
 0x247   :  { %3893 = vmatprep.subr.bf16.mxu0 %v4556_v59 }
 0x249   :  { %3874 = vmatpush3.bf16.msra.mxu1 %v4247_v58 }
 0x24a   :  { %3894 = vmatpush3.bf16.msra.mxu0 %v4248_v60  ;;  %3875 = vmatprep.subr.bf16.mxu1 %v4556_v59 }
 0x24b   :  { %3895 = vmatprep.subr.bf16.mxu0 %v4556_v59 }
 0x24d   :  { %3876 = vmatpush3.bf16.msra.mxu1 %v4249_v61 }
 0x24e   :  { %3896 = vmatpush3.bf16.msra.mxu0 %v4250_v62  ;;  %3877 = vmatprep.subr.bf16.mxu1 %v4556_v59 }
 0x24f   :  { %3897 = vmatprep.subr.bf16.mxu0 %v4556_v59 }
 0x251   :  { %3878 = vmatpush3.bf16.msra.mxu1 %v4251_v0 }
 0x252   :  { %3898 = vmatpush3.bf16.msra.mxu0 %v4252_v2  ;;  %3879 = vmatprep.subr.bf16.mxu1 %v4556_v59 }
 0x253   :  { %3899 = vmatprep.subr.bf16.mxu0 %v4556_v59 }
 0x255   :  { %3880 = vmatpush3.bf16.msra.mxu1 %v4253_v3 }
 0x256   :  { %3900 = vmatpush3.bf16.msra.mxu0 %v4254_v4  ;;  %3881 = vmatprep.subr.bf16.mxu1 %v4556_v59 }
 0x257   :  { %3901 = vmatprep.subr.bf16.mxu0 %v4556_v59 }
 0x259   :  { %3882 = vmatpush3.bf16.msra.mxu1 %v4255_v5 }
 0x25a   :  { %3902 = vmatpush3.bf16.msra.mxu0 %v4256_v6  ;;  %3907 = vmatprep.subr.bf16.mxu1 %v4556_v59 }
 0x25b   :  { %3927 = vmatprep.subr.bf16.mxu0 %v4556_v59 }
 0x25c   :  { %3884 = vmatmul.mubr.msk.bf16.vlgmr.msra.gmra.mxu1 %vm4602_vm13, %v3291_v19  ;;  %v3310_v19 = vpack.c.bf16 %v4629_v18, %v4614_v1  ;;  %v4269_v1 = vld [vmem:[#allocation5 + $0x398] sm:$0xff]  }
 0x25d   :  { %3904 = vmatmul.mubr.bf16.vlgmr.msra.gmra.mxu0 %v1688_v10  ;;  %3908 = vmatpush3.bf16.msra.mxu1 %v4257_v9 }
 0x25e   :  { %3923 = vmatprep.mubr.msk.bf16.mxu1 %vm4381_vm0, %v4556_v59  ;;  %3909 = vmatprep.subr.bf16.mxu1 %v4556_v59 }
 0x25f   :  { %3943 = vmatprep.mubr.msk.bf16.mxu0 %vm4381_vm0, %v4556_v59  ;;  %3928 = vmatpush3.bf16.msra.mxu0 %v4265_v20 }
 0x260   :  { %3929 = vmatprep.subr.bf16.mxu0 %v4556_v59 }
 0x261   :  { %3910 = vmatpush3.bf16.msra.mxu1 %v4258_v11 }
 0x262   :  { %3911 = vmatprep.subr.bf16.mxu1 %v4556_v59 }
 0x263   :  { %3930 = vmatpush3.bf16.msra.mxu0 %v4266_v21 }
 0x264   :  { %3931 = vmatprep.subr.bf16.mxu0 %v4556_v59 }
 0x265   :  { %3912 = vmatpush3.bf16.msra.mxu1 %v4259_v7 }
 0x266   :  { %3913 = vmatprep.subr.bf16.mxu1 %v4556_v59 }
 0x267   :  { %3932 = vmatpush3.bf16.msra.mxu0 %v4267_v22 }
 0x268   :  { %3933 = vmatprep.subr.bf16.mxu0 %v4556_v59 }
 0x269   :  { %3914 = vmatpush3.bf16.msra.mxu1 %v4260_v8 }
 0x26a   :  { %3915 = vmatprep.subr.bf16.mxu1 %v4556_v59 }
 0x26b   :  { %3934 = vmatpush3.bf16.msra.mxu0 %v4268_v23 }
 0x26c   :  { %3935 = vmatprep.subr.bf16.mxu0 %v4556_v59 }
 0x26d   :  { %3916 = vmatpush3.bf16.msra.mxu1 %v4261_v13 }
 0x26e   :  { %3917 = vmatprep.subr.bf16.mxu1 %v4556_v59 }
 0x26f   :  { %3936 = vmatpush3.bf16.msra.mxu0 %v4269_v1 }
 0x270   :  { %3937 = vmatprep.subr.bf16.mxu0 %v4556_v59 }
 0x271   :  { %3918 = vmatpush3.bf16.msra.mxu1 %v4262_v15  ;;  %v3312_v15 = vld [vmem:[%s4905_s2 + $0x2] ss:$0 sm:$0xff] }
 0x272   :  { %3919 = vmatprep.subr.bf16.mxu1 %v4556_v59 }
 0x273   :  { %3938 = vmatpush3.bf16.msra.mxu0 %v4270_v28 }
 0x274   :  { %3939 = vmatprep.subr.bf16.mxu0 %v4556_v59 }
 0x275   :  { %3920 = vmatpush3.bf16.msra.mxu1 %v4263_v16 }
 0x276   :  { %3921 = vmatprep.subr.bf16.mxu1 %v4556_v59 }
 0x277   :  { %3940 = vmatpush3.bf16.msra.mxu0 %v4271_v36  ;;  %v4282_v36 = vld [vmem:[#allocation5 + $0x3d8] sm:$0xff]  }
 0x278   :  { %3941 = vmatprep.subr.bf16.mxu0 %v4556_v59 }
 0x279   :  { %3922 = vmatpush3.bf16.msra.mxu1 %v4264_v17 }
 0x27a   :  { %3947 = vmatprep.subr.bf16.mxu1 %v4556_v59 }
 0x27b   :  { %3942 = vmatpush3.bf16.msra.mxu0 %v4272_v37  ;;  %v4283_v37 = vld [vmem:[#allocation5 + $0x410] sm:$0xff]  }
 0x27c   :  { %3924 = vmatmul.mubr.msk.bf16.vlgmr.msra.gmra.mxu1 %vm4660_vm14, %v3310_v19  ;;  %3967 = vmatprep.subr.bf16.mxu0 %v4556_v59 }
 0x27d   :  { %3963 = vmatprep.mubr.msk.bf16.mxu1 %vm4381_vm0, %v4556_v59  ;;  %3948 = vmatpush3.bf16.msra.mxu1 %v4273_v38  ;;  %v4284_v38 = vld [vmem:[#allocation5 + $0x3d0] sm:$0xff]  }
 0x27e   :  { %3949 = vmatprep.subr.bf16.mxu1 %v4556_v59 }
 0x281   :  { %3950 = vmatpush3.bf16.msra.mxu1 %v4275_v39  ;;  %v4285_v39 = vld [vmem:[#allocation5 + $0x408] sm:$0xff]  }
 0x282   :  { %3951 = vmatprep.subr.bf16.mxu1 %v4556_v59 }
 0x285   :  { %3952 = vmatpush3.bf16.msra.mxu1 %v4277_v12  ;;  %v4286_v12 = vld [vmem:[#allocation5 + $0x3c8] sm:$0xff]  }
 0x286   :  { %3953 = vmatprep.subr.bf16.mxu1 %v4556_v59 }
 0x2bc   :  { %v1027_v18 = vpop.f32.mrf.mxu1 }
 0x2bd   :  { %v1116_v24 = vpop.f32.mrf.mxu0 }
 0x2be   :  { %v1117_v25 = vadd.f32 %v1116_v24, %v1027_v18  ;;  %v3765_v26 = vpop.f32.mrf.mxu1 }
 0x2bf   :  { %v3785_v27 = vpop.f32.mrf.mxu0 }
 0x2c0   :  { %v1030_v29 = vpop.f32.mrf.mxu1  ;;  %v4274_v27 = vld [vmem:[#allocation5 + $0x3f8] sm:$0xff]  }
 0x2c1   :  { %v1119_v30 = vpop.f32.mrf.mxu0 }
 0x2c2   :  { %v1120_v31 = vadd.f32 %v1119_v30, %v1030_v29  ;;  %v3766_v32 = vpop.f32.mrf.mxu1  ;;  %v4276_v29 = vld [vmem:[#allocation5 + $0x3f0] sm:$0xff]   ;;  %v4278_v30 = vld [vmem:[#allocation5 + $0x3e8] sm:$0xff]  }
 0x2c3   :  { %v3786_v33 = vpop.f32.mrf.mxu0  ;;  %v4280_v32 = vld [vmem:[#allocation5 + $0x3e0] sm:$0xff]  }
 0x2c4   :  { %v4281_v33 = vld [vmem:[#allocation5 + $0x418] sm:$0xff]  }
 0x2dc   :  { %v1227_v14 = vpop.f32.mrf.mxu1 }
 0x2dd   :  { %v1340_v40 = vpop.f32.mrf.mxu0  ;;  %v1234_v41 = vadd.f32 %v1227_v14, %v1117_v25  ;;  %v4287_v14 = vld [vmem:[#allocation5 + $0x400] sm:$0xff]  }
 0x2de   :  { %v3805_v42 = vpop.f32.mrf.mxu1 }
 0x2df   :  { %v3825_v43 = vpop.f32.mrf.mxu0  ;;  %v1347_v44 = vadd.f32 %v1340_v40, %v1234_v41  ;;  %v4288_v40 = vld [vmem:[#allocation5 + $0x3c0] sm:$0xff]  }
 0x2e0   :  { %v1230_v34 = vpop.f32.mrf.mxu1  ;;  %v3313_v41 = vld [vmem:[%s4905_s2 + $0x3] ss:$0 sm:$0xff] }
 0x2e1   :  { %v1343_v45 = vpop.f32.mrf.mxu0  ;;  %v1235_v46 = vadd.f32 %v1230_v34, %v1120_v31  ;;  %v4279_v31 = vld [vmem:[#allocation5 + $0x420] sm:$0xff]  }
 0x2e2   :  { %v3806_v47 = vpop.f32.mrf.mxu1  ;;  %3954 = vmatpush3.bf16.msra.mxu1 %v4279_v31  ;;  %v4316_v31 = vld [vmem:[#allocation5 + $0x510] sm:$0xff]  }
 0x2e3   :  { %v3826_v48 = vpop.f32.mrf.mxu0  ;;  %v1348_v49 = vadd.f32 %v1343_v45, %v1235_v46  ;;  %3955 = vmatprep.subr.bf16.mxu1 %v4556_v59 }
 0x2e6   :  { %3956 = vmatpush3.bf16.msra.mxu1 %v4281_v33  ;;  %v4318_v33 = vld [vmem:[#allocation5 + $0x508] sm:$0xff]  }
 0x2e7   :  { %3957 = vmatprep.subr.bf16.mxu1 %v4556_v59 }
 0x2ea   :  { %3958 = vmatpush3.bf16.msra.mxu1 %v4283_v37  ;;  %v4320_v37 = vld [vmem:[#allocation5 + $0x500] sm:$0xff]  }
 0x2eb   :  { %3959 = vmatprep.subr.bf16.mxu1 %v4556_v59 }
 0x2ee   :  { %3960 = vmatpush3.bf16.msra.mxu1 %v4285_v39 }
 0x2ef   :  { %3961 = vmatprep.subr.bf16.mxu1 %v4556_v59 }
 0x2f2   :  { %3962 = vmatpush3.bf16.msra.mxu1 %v4287_v14  ;;  %v4322_v14 = vld [vmem:[#allocation5 + $0x5b8] sm:$0xff]  }
 0x2f3   :  { %3987 = vmatprep.subr.bf16.mxu1 %v4556_v59 }
 0x2fc   :  { %v1451_v50 = vpop.f32.mrf.mxu1 }
 0x2fd   :  { %v1564_v51 = vpop.f32.mrf.mxu0  ;;  %v1458_v5 = vadd.f32 %v1451_v50, %v1347_v44 }
 0x2fe   :  { %v3845_v52 = vpop.f32.mrf.mxu1 }
 0x2ff   :  { %v3865_v53 = vpop.f32.mrf.mxu0  ;;  %v1571_v6 = vadd.f32 %v1564_v51, %v1458_v5  ;;  %v4297_v5 = vld [vmem:[#allocation5 + $0x458] sm:$0xff]  }
 0x300   :  { %v1454_v54 = vpop.f32.mrf.mxu1  ;;  %v4289_v53 = vld [vmem:[#allocation5 + $0x478] sm:$0xff]  }
 0x301   :  { %v1567_v55 = vpop.f32.mrf.mxu0  ;;  %v1459_v9 = vadd.f32 %v1454_v54, %v1348_v49  ;;  %v4290_v54 = vld [vmem:[#allocation5 + $0x4b8] sm:$0xff]  }
 0x302   :  { %v3846_v56 = vpop.f32.mrf.mxu1 }
 0x303   :  { %v3866_v57 = vpop.f32.mrf.mxu0  ;;  %v1572_v11 = vadd.f32 %v1567_v55, %v1459_v9  ;;  %v4299_v9 = vld [vmem:[#allocation5 + $0x450] sm:$0xff]  }
 0x31c   :  { %v1677_v58 = vpop.f32.mrf.mxu1 }
 0x31d   :  { %v1788_v60 = vpop.f32.mrf.mxu0  ;;  %v1684_v10 = vadd.f32 %v1677_v58, %v1571_v6  ;;  %v4298_v6 = vld [vmem:[#allocation5 + $0x498] sm:$0xff]  }
 0x31e   :  { %v3885_v61 = vpop.f32.mrf.mxu1 }
 0x31f   :  { %v3905_v62 = vpop.f32.mrf.mxu0  ;;  %v1795_v7 = vadd.f32 %v1788_v60, %v1684_v10  ;;  %v4291_v61 = vld [vmem:[#allocation5 + $0x470] sm:$0xff]  }
 0x320   :  { %v1680_v0 = vpop.f32.mrf.mxu1  ;;  %v4292_v62 = vld [vmem:[#allocation5 + $0x4b0] sm:$0xff]  }
 0x321   :  { %v1791_v2 = vpop.f32.mrf.mxu0  ;;  %v1685_v8 = vadd.f32 %v1680_v0, %v1572_v11  ;;  %v4293_v0 = vld [vmem:[#allocation5 + $0x468] sm:$0xff]   ;;  %v4300_v10 = vld [vmem:[#allocation5 + $0x490] sm:$0xff]  }
 0x322   :  { %v3886_v3 = vpop.f32.mrf.mxu1  ;;  %v4301_v11 = vld [vmem:[#allocation5 + $0x448] sm:$0xff]  }
 0x323   :  { %v3906_v4 = vpop.f32.mrf.mxu0  ;;  %v1796_v19 = vadd.f32 %v1791_v2, %v1685_v8  ;;  %v4294_v2 = vld [vmem:[#allocation5 + $0x4a8] sm:$0xff]   ;;  %v4295_v3 = vld [vmem:[#allocation5 + $0x460] sm:$0xff]  }
 0x324   :  { %v4296_v4 = vld [vmem:[#allocation5 + $0x4a0] sm:$0xff]  }
 0x325   :  { %v4303_v8 = vld [vmem:[#allocation5 + $0x440] sm:$0xff]  }
 0x33c   :  { %v1901_v13 = vpop.f32.mrf.mxu1 }
 0x33d   :  { %v1908_v16 = vadd.f32 %v1901_v13, %v1795_v7  ;;  %v4302_v7 = vld [vmem:[#allocation5 + $0x488] sm:$0xff]   ;;  %v4304_v13 = vld [vmem:[#allocation5 + $0x480] sm:$0xff]  }
 0x33e   :  { %v3925_v17 = vpop.f32.mrf.mxu1 }
 0x33f   :  { %v1915_v20 = vadd.f32 %v3312_v15, %v1908_v16  ;;  %v4305_v17 = vld [vmem:[#allocation5 + $0x4f8] sm:$0xff]  }
 0x340   :  { %v1904_v21 = vpop.f32.mrf.mxu1 }
 0x341   :  { %v1909_v22 = vadd.f32 %v1904_v21, %v1796_v19  ;;  %v1917_v1 = vmul.f32 0.1, %v1915_v20  ;;  %v4306_v21 = vld [vmem:[#allocation5 + $0x538] sm:$0xff]  }
 0x342   :  { %v3926_v23 = vpop.f32.mrf.mxu1 }
 0x343   :  { %v1916_v18 = vadd.f32 %v3312_v15, %v1909_v22  ;;  %v1919_v25 = vmax.f32 %v1915_v20, %v1917_v1  ;;  %v4307_v1 = vld [vmem:[#allocation5 + $0x4f0] sm:$0xff]  }
 0x345   :  { %v1918_v24 = vmul.f32 0.1, %v1916_v18 }
 0x347   :  { %v1920_v26 = vmax.f32 %v1916_v18, %v1918_v24  ;;  %v4308_v18 = vld [vmem:[#allocation5 + $0x530] sm:$0xff]   ;;  %v4309_v24 = vld [vmem:[#allocation5 + $0x4e8] sm:$0xff]  }
 0x349   :  { %v1921_v28 = vpack.c.bf16 %v1920_v26, %v1919_v25  ;;  %v4310_v25 = vld [vmem:[#allocation5 + $0x528] sm:$0xff]   ;;  %v4311_v26 = vld [vmem:[#allocation5 + $0x4e0] sm:$0xff]  }
 0x34b   :  { %3944 = vmatmul.mubr.bf16.vlgmr.msra.gmra.mxu0 %v1921_v28  ;;  %v4313_v28 = vld [vmem:[#allocation5 + $0x4d8] sm:$0xff]  }
 0x34c   :  { %3968 = vmatpush3.bf16.msra.mxu0 %v4274_v27  ;;  %3983 = vmatprep.mubr.msk.bf16.mxu0 %vm4381_vm0, %v4556_v59  ;;  %v4312_v27 = vld [vmem:[#allocation5 + $0x520] sm:$0xff]  }
 0x34d   :  { %3969 = vmatprep.subr.bf16.mxu0 %v4556_v59 }
 0x350   :  { %3970 = vmatpush3.bf16.msra.mxu0 %v4276_v29  ;;  %v4314_v29 = vld [vmem:[#allocation5 + $0x518] sm:$0xff]  }
 0x351   :  { %3971 = vmatprep.subr.bf16.mxu0 %v4556_v59 }
 0x354   :  { %3972 = vmatpush3.bf16.msra.mxu0 %v4278_v30  ;;  %v4315_v30 = vld [vmem:[#allocation5 + $0x4d0] sm:$0xff]  }
 0x355   :  { %3973 = vmatprep.subr.bf16.mxu0 %v4556_v59 }
 0x358   :  { %3974 = vmatpush3.bf16.msra.mxu0 %v4280_v32  ;;  %v4317_v32 = vld [vmem:[#allocation5 + $0x4c8] sm:$0xff]  }
 0x359   :  { %3975 = vmatprep.subr.bf16.mxu0 %v4556_v59 }
 0x35c   :  { %3976 = vmatpush3.bf16.msra.mxu0 %v4282_v36  ;;  %v4319_v36 = vld [vmem:[#allocation5 + $0x4c0] sm:$0xff]  }
 0x35d   :  { %3977 = vmatprep.subr.bf16.mxu0 %v4556_v59 }
 0x360   :  { %3978 = vmatpush3.bf16.msra.mxu0 %v4284_v38 }
 0x361   :  { %3979 = vmatprep.subr.bf16.mxu0 %v4556_v59 }
 0x364   :  { %3980 = vmatpush3.bf16.msra.mxu0 %v4286_v12  ;;  %v4321_v12 = vld [vmem:[#allocation5 + $0x578] sm:$0xff]  }
 0x365   :  { %3981 = vmatprep.subr.bf16.mxu0 %v4556_v59 }
 0x368   :  { %3982 = vmatpush3.bf16.msra.mxu0 %v4288_v40 }
 0x369   :  { %4007 = vmatprep.subr.bf16.mxu0 %v4556_v59 }
 0x40b   :  { %v2026_v42 = vpop.f32.mrf.mxu0 }
 0x40c   :  { %v2027_v43 = vadd.f32 %v3313_v41, %v2026_v42  ;;  %v4324_v42 = vld [vmem:[#allocation5 + $0x5b0] sm:$0xff]  }
 0x40d   :  { %v3945_v44 = vpop.f32.mrf.mxu0 }
 0x40e   :  { %v2033_v34 = vmul.f32 0.1, %v2027_v43  ;;  %v4326_v44 = vld [vmem:[#allocation5 + $0x5a8] sm:$0xff]  }
 0x40f   :  { %v2029_v45 = vpop.f32.mrf.mxu0 }
 0x410   :  { %v4778_v46 = vmax.f32 %v2027_v43, %v2033_v34  ;;  %v2030_v47 = vadd.f32 %v3313_v41, %v2029_v45  ;;  %v4323_v41 = vld [vmem:[#allocation5 + $0x570] sm:$0xff]   ;;  %v4325_v43 = vld [vmem:[#allocation5 + $0x568] sm:$0xff]   ;;  %v4327_v34 = vld [vmem:[#allocation5 + $0x560] sm:$0xff]  }
 0x411   :  { %v3946_v48 = vpop.f32.mrf.mxu0  ;;  %v4328_v45 = vld [vmem:[#allocation5 + $0x5a0] sm:$0xff]  }
 0x412   :  { %2041 = vst [vmem:[#allocation4 + $0x5] sm:$0xff] %v4778_v46  ;;  %v2034_v49 = vmul.f32 0.1, %v2030_v47  ;;  %v4331_v48 = vld [vmem:[#allocation5 + $0x550] sm:$0xff]  }
 0x414   :  { %v4781_v50 = vmax.f32 %v2030_v47, %v2034_v49  ;;  %v4330_v47 = vld [vmem:[#allocation5 + $0x598] sm:$0xff]   ;;  %v4332_v49 = vld [vmem:[#allocation5 + $0x590] sm:$0xff]  }
 0x416   :  { %2042 = vst [vmem:[#allocation4 + $0xd] sm:$0xff] %v4781_v50  ;;  %v2491_v51 = vpack.c.bf16 %v4781_v50, %v4778_v46  ;;  %v4329_v46 = vld [vmem:[#allocation5 + $0x558] sm:$0xff]   ;;  %v4333_v50 = vld [vmem:[#allocation5 + $0x548] sm:$0xff]  }
 0x419   :  { %v2065_v52 = vld [vmem:[#allocation4 + $0x1] sm:$0xff] }
 0x41a   :  { %v2043_v56 = vld [vmem:[#allocation4] sm:$0xff] }
 0x41b   :  { %v2263_v19 = vld [vmem:[#allocation4 + $0x2] sm:$0xff] }
 0x41c   :  { %v2376_v20 = vld [vmem:[#allocation4 + $0x4] sm:$0xff] }
 0x41d   :  { %v4786_v55 = vld [vmem:[#allocation4 + $0x9] sm:$0xff] }
 0x41e   :  { %v4788_v57 = vld [vmem:[#allocation4 + $0x8] sm:$0xff]  ;;  %v2067_v58 = vpack.c.bf16 %v4786_v55, %v2065_v52  ;;  %v4335_v52 = vld [vmem:[#allocation5 + $0x540] sm:$0xff]  }
 0x41f   :  { %v3339_v60 = vpack.c.bf16 %v4788_v57, %v2043_v56  ;;  %v4812_v15 = vld [vmem:[#allocation4 + $0xa] sm:$0xff] }
 0x420   :  { %3964 = vmatmul.mubr.bf16.vlgmr.msra.gmra.mxu1 %v2067_v58  ;;  %v2377_v16 = vld [vmem:[#allocation4 + $0xc] sm:$0xff]  ;;  %v3350_v22 = vpack.c.bf16 %v4812_v15, %v2263_v19  ;;  %v4337_v58 = vld [vmem:[#allocation5 + $0x5f8] sm:$0xff]  }
 0x421   :  { %3984 = vmatmul.mubr.msk.bf16.vlgmr.msra.gmra.mxu0 %vm4602_vm13, %v3339_v60  ;;  %3988 = vmatpush3.bf16.msra.mxu1 %v4289_v53  ;;  %v3361_v23 = vpack.c.bf16 %v2377_v16, %v2376_v20  ;;  %v2600_v38 = vld [vmem:[#allocation4 + $0x6] sm:$0xff]  ;;  %v2601_v39 = vld [vmem:[#allocation4 + $0xe] sm:$0xff] }
 0x422   :  { %4008 = vmatpush3.bf16.msra.mxu0 %v4290_v54  ;;  %3989 = vmatprep.subr.bf16.mxu1 %v4556_v59  ;;  %v3380_v40 = vpack.c.bf16 %v2601_v39, %v2600_v38  ;;  %v4336_v53 = vld [vmem:[#allocation5 + $0x580] sm:$0xff]   ;;  %v2714_v54 = vld [vmem:[#allocation4 + $0x10] sm:$0xff] }
 0x423   :  { %4009 = vmatprep.subr.bf16.mxu0 %v4556_v59  ;;  %4003 = vmatprep.mubr.msk.bf16.mxu1 %vm4381_vm0, %v4556_v59  ;;  %v2827_v56 = vld [vmem:[#allocation4 + $0x11] sm:$0xff]  ;;  %v3391_v60 = vpack.c.bf16 %v2714_v54, %v4788_v57  ;;  %v4340_v57 = vld [vmem:[#allocation5 + $0x5e0] sm:$0xff]  }
 0x424   :  { %4023 = vmatprep.mubr.msk.bf16.mxu0 %vm4381_vm0, %v4556_v59 }
 0x425   :  { %3990 = vmatpush3.bf16.msra.mxu1 %v4291_v61  ;;  %v2828_v61 = vpack.c.bf16 %v2827_v56, %v4786_v55  ;;  %v4339_v55 = vld [vmem:[#allocation5 + $0x5e8] sm:$0xff]  }
 0x426   :  { %4010 = vmatpush3.bf16.msra.mxu0 %v4292_v62  ;;  %3991 = vmatprep.subr.bf16.mxu1 %v4556_v59  ;;  %v4338_v62 = vld [vmem:[#allocation5 + $0x5f0] sm:$0xff]  }
 0x427   :  { %4011 = vmatprep.subr.bf16.mxu0 %v4556_v59 }
 0x429   :  { %3992 = vmatpush3.bf16.msra.mxu1 %v4293_v0  ;;  %v4342_v0 = vld [vmem:[#allocation5 + $0x5d0] sm:$0xff]  }
 0x42a   :  { %4012 = vmatpush3.bf16.msra.mxu0 %v4294_v2  ;;  %3993 = vmatprep.subr.bf16.mxu1 %v4556_v59  ;;  %v4343_v2 = vld [vmem:[#allocation5 + $0x5c8] sm:$0xff]  }
 0x42b   :  { %4013 = vmatprep.subr.bf16.mxu0 %v4556_v59 }
 0x42d   :  { %3994 = vmatpush3.bf16.msra.mxu1 %v4295_v3  ;;  %v4344_v3 = vld [vmem:[#allocation5 + $0x5c0] sm:$0xff]  }
 0x42e   :  { %4014 = vmatpush3.bf16.msra.mxu0 %v4296_v4  ;;  %3995 = vmatprep.subr.bf16.mxu1 %v4556_v59  ;;  %v2938_v4 = vld [vmem:[#allocation4 + $0x12] sm:$0xff] }
 0x42f   :  { %4015 = vmatprep.subr.bf16.mxu0 %v4556_v59 }
 0x431   :  { %3996 = vmatpush3.bf16.msra.mxu1 %v4297_v5  ;;  %v3410_v5 = vpack.c.bf16 %v2938_v4, %v4812_v15 }
 0x432   :  { %4016 = vmatpush3.bf16.msra.mxu0 %v4298_v6  ;;  %3997 = vmatprep.subr.bf16.mxu1 %v4556_v59  ;;  %v4345_v6 = vld [vmem:[#allocation5 + $0x638] sm:$0xff]  }
 0x433   :  { %4017 = vmatprep.subr.bf16.mxu0 %v4556_v59 }
 0x435   :  { %3998 = vmatpush3.bf16.msra.mxu1 %v4299_v9  ;;  %v4346_v9 = vld [vmem:[#allocation5 + $0x630] sm:$0xff]  }
 0x436   :  { %4018 = vmatpush3.bf16.msra.mxu0 %v4300_v10  ;;  %3999 = vmatprep.subr.bf16.mxu1 %v4556_v59  ;;  %v4347_v10 = vld [vmem:[#allocation5 + $0x628] sm:$0xff]  }
 0x437   :  { %4019 = vmatprep.subr.bf16.mxu0 %v4556_v59 }
 0x439   :  { %4000 = vmatpush3.bf16.msra.mxu1 %v4301_v11  ;;  %v4348_v11 = vld [vmem:[#allocation5 + $0x620] sm:$0xff]  }
 0x43a   :  { %4020 = vmatpush3.bf16.msra.mxu0 %v4302_v7  ;;  %4001 = vmatprep.subr.bf16.mxu1 %v4556_v59  ;;  %v4349_v7 = vld [vmem:[#allocation5 + $0x618] sm:$0xff]  }
 0x43b   :  { %4021 = vmatprep.subr.bf16.mxu0 %v4556_v59 }
 0x43d   :  { %4002 = vmatpush3.bf16.msra.mxu1 %v4303_v8 }
 0x43e   :  { %4022 = vmatpush3.bf16.msra.mxu0 %v4304_v13  ;;  %4027 = vmatprep.subr.bf16.mxu1 %v4556_v59 }
 0x43f   :  { %4047 = vmatprep.subr.bf16.mxu0 %v4556_v59 }
 0x440   :  { %4004 = vmatmul.mubr.msk.bf16.vlgmr.msra.gmra.mxu1 %vm4660_vm14, %v3350_v22 }
 0x441   :  { %4024 = vmatmul.mubr.msk.bf16.vlgmr.msra.gmra.mxu0 %vm4602_vm13, %v3361_v23  ;;  %4028 = vmatpush3.bf16.msra.mxu1 %v4305_v17  ;;  %v4350_v17 = vld [vmem:[#allocation5 + $0x610] sm:$0xff]  }
 0x442   :  { %4048 = vmatpush3.bf16.msra.mxu0 %v4306_v21  ;;  %4029 = vmatprep.subr.bf16.mxu1 %v4556_v59 }
 0x443   :  { %4049 = vmatprep.subr.bf16.mxu0 %v4556_v59  ;;  %4043 = vmatprep.mubr.msk.bf16.mxu1 %vm4381_vm0, %v4556_v59 }
 0x444   :  { %4063 = vmatprep.mubr.msk.bf16.mxu0 %vm4381_vm0, %v4556_v59 }
 0x445   :  { %4030 = vmatpush3.bf16.msra.mxu1 %v4307_v1  ;;  %v4351_v1 = vld [vmem:[#allocation5 + $0x608] sm:$0xff]  }
 0x446   :  { %4050 = vmatpush3.bf16.msra.mxu0 %v4308_v18  ;;  %4031 = vmatprep.subr.bf16.mxu1 %v4556_v59  ;;  %v4352_v18 = vld [vmem:[#allocation5 + $0x600] sm:$0xff]  }
 0x447   :  { %4051 = vmatprep.subr.bf16.mxu0 %v4556_v59 }
 0x449   :  { %4032 = vmatpush3.bf16.msra.mxu1 %v4309_v24 }
 0x44a   :  { %4052 = vmatpush3.bf16.msra.mxu0 %v4310_v25  ;;  %4033 = vmatprep.subr.bf16.mxu1 %v4556_v59 }
 0x44b   :  { %4053 = vmatprep.subr.bf16.mxu0 %v4556_v59 }
 0x44d   :  { %4034 = vmatpush3.bf16.msra.mxu1 %v4311_v26 }
 0x44e   :  { %4054 = vmatpush3.bf16.msra.mxu0 %v4312_v27  ;;  %4035 = vmatprep.subr.bf16.mxu1 %v4556_v59 }
 0x44f   :  { %4055 = vmatprep.subr.bf16.mxu0 %v4556_v59 }
 0x451   :  { %4036 = vmatpush3.bf16.msra.mxu1 %v4313_v28 }
 0x452   :  { %4056 = vmatpush3.bf16.msra.mxu0 %v4314_v29  ;;  %4037 = vmatprep.subr.bf16.mxu1 %v4556_v59 }
 0x453   :  { %4057 = vmatprep.subr.bf16.mxu0 %v4556_v59 }
 0x455   :  { %4038 = vmatpush3.bf16.msra.mxu1 %v4315_v30 }
 0x456   :  { %4058 = vmatpush3.bf16.msra.mxu0 %v4316_v31  ;;  %4039 = vmatprep.subr.bf16.mxu1 %v4556_v59 }
 0x457   :  { %4059 = vmatprep.subr.bf16.mxu0 %v4556_v59 }
 0x459   :  { %4040 = vmatpush3.bf16.msra.mxu1 %v4317_v32 }
 0x45a   :  { %4060 = vmatpush3.bf16.msra.mxu0 %v4318_v33  ;;  %4041 = vmatprep.subr.bf16.mxu1 %v4556_v59 }
 0x45b   :  { %4061 = vmatprep.subr.bf16.mxu0 %v4556_v59 }
 0x45d   :  { %4042 = vmatpush3.bf16.msra.mxu1 %v4319_v36 }
 0x45e   :  { %4062 = vmatpush3.bf16.msra.mxu0 %v4320_v37  ;;  %4067 = vmatprep.subr.bf16.mxu1 %v4556_v59 }
 0x45f   :  { %4087 = vmatprep.subr.bf16.mxu0 %v4556_v59 }
 0x460   :  { %4044 = vmatmul.mubr.bf16.vlgmr.msra.gmra.mxu1 %v2491_v51  ;;  %v4334_v51 = vld [vmem:[#allocation5 + $0x588] sm:$0xff]  }
 0x461   :  { %4064 = vmatmul.mubr.msk.bf16.vlgmr.msra.gmra.mxu0 %vm4660_vm14, %v3380_v40  ;;  %4068 = vmatpush3.bf16.msra.mxu1 %v4321_v12 }
 0x462   :  { %4088 = vmatpush3.bf16.msra.mxu0 %v4322_v14  ;;  %4069 = vmatprep.subr.bf16.mxu1 %v4556_v59 }
 0x463   :  { %4089 = vmatprep.subr.bf16.mxu0 %v4556_v59  ;;  %4083 = vmatprep.mubr.msk.bf16.mxu1 %vm4381_vm0, %v4556_v59 }
 0x464   :  { %4103 = vmatprep.mubr.msk.bf16.mxu0 %vm4381_vm0, %v4556_v59 }
 0x465   :  { %4070 = vmatpush3.bf16.msra.mxu1 %v4323_v41 }
 0x466   :  { %4090 = vmatpush3.bf16.msra.mxu0 %v4324_v42  ;;  %4071 = vmatprep.subr.bf16.mxu1 %v4556_v59 }
 0x467   :  { %4091 = vmatprep.subr.bf16.mxu0 %v4556_v59 }
 0x469   :  { %4072 = vmatpush3.bf16.msra.mxu1 %v4325_v43 }
 0x46a   :  { %4092 = vmatpush3.bf16.msra.mxu0 %v4326_v44  ;;  %4073 = vmatprep.subr.bf16.mxu1 %v4556_v59 }
 0x46b   :  { %4093 = vmatprep.subr.bf16.mxu0 %v4556_v59 }
 0x46d   :  { %4074 = vmatpush3.bf16.msra.mxu1 %v4327_v34 }
 0x46e   :  { %4094 = vmatpush3.bf16.msra.mxu0 %v4328_v45  ;;  %4075 = vmatprep.subr.bf16.mxu1 %v4556_v59 }
 0x46f   :  { %4095 = vmatprep.subr.bf16.mxu0 %v4556_v59 }
 0x471   :  { %4076 = vmatpush3.bf16.msra.mxu1 %v4329_v46 }
 0x472   :  { %4096 = vmatpush3.bf16.msra.mxu0 %v4330_v47  ;;  %4077 = vmatprep.subr.bf16.mxu1 %v4556_v59 }
 0x473   :  { %4097 = vmatprep.subr.bf16.mxu0 %v4556_v59 }
 0x475   :  { %4078 = vmatpush3.bf16.msra.mxu1 %v4331_v48 }
 0x476   :  { %4098 = vmatpush3.bf16.msra.mxu0 %v4332_v49  ;;  %4079 = vmatprep.subr.bf16.mxu1 %v4556_v59 }
 0x477   :  { %4099 = vmatprep.subr.bf16.mxu0 %v4556_v59 }
 0x479   :  { %4080 = vmatpush3.bf16.msra.mxu1 %v4333_v50 }
 0x47a   :  { %4100 = vmatpush3.bf16.msra.mxu0 %v4334_v51  ;;  %4081 = vmatprep.subr.bf16.mxu1 %v4556_v59 }
 0x47b   :  { %4101 = vmatprep.subr.bf16.mxu0 %v4556_v59 }
 0x47d   :  { %4082 = vmatpush3.bf16.msra.mxu1 %v4335_v52 }
 0x47e   :  { %4102 = vmatpush3.bf16.msra.mxu0 %v4336_v53  ;;  %4107 = vmatprep.subr.bf16.mxu1 %v4556_v59 }
 0x47f   :  { %4127 = vmatprep.subr.bf16.mxu0 %v4556_v59 }
 0x480   :  { %4084 = vmatmul.mubr.msk.bf16.vlgmr.msra.gmra.mxu1 %vm4602_vm13, %v3391_v60 }
 0x481   :  { %4104 = vmatmul.mubr.bf16.vlgmr.msra.gmra.mxu0 %v2828_v61  ;;  %4108 = vmatpush3.bf16.msra.mxu1 %v4337_v58  ;;  %v3412_v61 = vld [vmem:[%s4905_s2 + $0x4] ss:$0 sm:$0xff] }
 0x482   :  { %4123 = vmatprep.mubr.msk.bf16.mxu1 %vm4381_vm0, %v4556_v59  ;;  %4109 = vmatprep.subr.bf16.mxu1 %v4556_v59 }
 0x483   :  { %4143 = vmatprep.mubr.msk.bf16.mxu0 %vm4381_vm0, %v4556_v59  ;;  %4128 = vmatpush3.bf16.msra.mxu0 %v4345_v6 }
 0x484   :  { %4129 = vmatprep.subr.bf16.mxu0 %v4556_v59 }
 0x485   :  { %4110 = vmatpush3.bf16.msra.mxu1 %v4338_v62 }
 0x486   :  { %4111 = vmatprep.subr.bf16.mxu1 %v4556_v59 }
 0x487   :  { %4130 = vmatpush3.bf16.msra.mxu0 %v4346_v9 }
 0x488   :  { %4131 = vmatprep.subr.bf16.mxu0 %v4556_v59 }
 0x489   :  { %4112 = vmatpush3.bf16.msra.mxu1 %v4339_v55 }
 0x48a   :  { %4113 = vmatprep.subr.bf16.mxu1 %v4556_v59 }
 0x48b   :  { %4132 = vmatpush3.bf16.msra.mxu0 %v4347_v10 }
 0x48c   :  { %4133 = vmatprep.subr.bf16.mxu0 %v4556_v59 }
 0x48d   :  { %4114 = vmatpush3.bf16.msra.mxu1 %v4340_v57 }
 0x48e   :  { %4115 = vmatprep.subr.bf16.mxu1 %v4556_v59 }
 0x48f   :  { %4134 = vmatpush3.bf16.msra.mxu0 %v4348_v11 }
 0x490   :  { %4135 = vmatprep.subr.bf16.mxu0 %v4556_v59 }
 0x491   :  { %4116 = vmatpush3.bf16.msra.mxu1 %v4341_v63 }
 0x492   :  { %4117 = vmatprep.subr.bf16.mxu1 %v4556_v59 }
 0x493   :  { %4136 = vmatpush3.bf16.msra.mxu0 %v4349_v7  ;;  %v3413_v7 = vld [vmem:[%s4905_s2 + $0x5] ss:$0 sm:$0xff] }
 0x494   :  { %4137 = vmatprep.subr.bf16.mxu0 %v4556_v59 }
 0x495   :  { %4118 = vmatpush3.bf16.msra.mxu1 %v4342_v0 }
 0x496   :  { %4119 = vmatprep.subr.bf16.mxu1 %v4556_v59 }
 0x497   :  { %4138 = vmatpush3.bf16.msra.mxu0 %v4350_v17 }
 0x498   :  { %4139 = vmatprep.subr.bf16.mxu0 %v4556_v59 }
 0x499   :  { %4120 = vmatpush3.bf16.msra.mxu1 %v4343_v2 }
 0x49a   :  { %4121 = vmatprep.subr.bf16.mxu1 %v4556_v59 }
 0x49b   :  { %4140 = vmatpush3.bf16.msra.mxu0 %v4351_v1 }
 0x49c   :  { %4141 = vmatprep.subr.bf16.mxu0 %v4556_v59 }
 0x49d   :  { %4122 = vmatpush3.bf16.msra.mxu1 %v4344_v3 }
 0x49f   :  { %4142 = vmatpush3.bf16.msra.mxu0 %v4352_v18 }
 0x4a0   :  { %4124 = vmatmul.mubr.msk.bf16.vlgmr.msra.gmra.mxu1 %vm4660_vm14, %v3410_v5 }
 0x4e0   :  { %v2167_v8 = vpop.f32.mrf.mxu1 }
 0x4e1   :  { %v2256_v35 = vpop.f32.mrf.mxu0 }
 0x4e2   :  { %v2257_v13 = vadd.f32 %v2256_v35, %v2167_v8  ;;  %v3965_v15 = vpop.f32.mrf.mxu1 }
 0x4e3   :  { %v3985_v16 = vpop.f32.mrf.mxu0 }
 0x4e4   :  { %v2170_v19 = vpop.f32.mrf.mxu1 }
 0x4e5   :  { %v2259_v20 = vpop.f32.mrf.mxu0 }
 0x4e6   :  { %v2260_v21 = vadd.f32 %v2259_v20, %v2170_v19  ;;  %v3966_v22 = vpop.f32.mrf.mxu1 }
 0x4e7   :  { %v3986_v23 = vpop.f32.mrf.mxu0 }
 0x500   :  { %v2367_v24 = vpop.f32.mrf.mxu1 }
 0x501   :  { %v2480_v25 = vpop.f32.mrf.mxu0  ;;  %v2374_v26 = vadd.f32 %v2367_v24, %v2257_v13 }
 0x502   :  { %v4005_v27 = vpop.f32.mrf.mxu1 }
 0x503   :  { %v4025_v28 = vpop.f32.mrf.mxu0  ;;  %v2487_v29 = vadd.f32 %v2480_v25, %v2374_v26 }
 0x504   :  { %v2370_v30 = vpop.f32.mrf.mxu1 }
 0x505   :  { %v2483_v31 = vpop.f32.mrf.mxu0  ;;  %v2375_v32 = vadd.f32 %v2370_v30, %v2260_v21 }
 0x506   :  { %v4006_v33 = vpop.f32.mrf.mxu1 }
 0x507   :  { %v4026_v36 = vpop.f32.mrf.mxu0  ;;  %v2488_v37 = vadd.f32 %v2483_v31, %v2375_v32 }
 0x520   :  { %v2591_v38 = vpop.f32.mrf.mxu1 }
 0x521   :  { %v2704_v39 = vpop.f32.mrf.mxu0  ;;  %v2598_v50 = vadd.f32 %v2591_v38, %v2487_v29 }
 0x522   :  { %v4045_v12 = vpop.f32.mrf.mxu1 }
 0x523   :  { %v4065_v14 = vpop.f32.mrf.mxu0  ;;  %v2711_v51 = vadd.f32 %v2704_v39, %v2598_v50 }
 0x524   :  { %v2594_v40 = vpop.f32.mrf.mxu1 }
 0x525   :  { %v2707_v59 = vpop.f32.mrf.mxu0  ;;  %v2599_v52 = vadd.f32 %v2594_v40, %v2488_v37 }
 0x526   :  { %v4046_v41 = vpop.f32.mrf.mxu1 }
 0x527   :  { %v4066_v42 = vpop.f32.mrf.mxu0  ;;  %v2712_v54 = vadd.f32 %v2707_v59, %v2599_v52 }
 0x540   :  { %v2817_v43 = vpop.f32.mrf.mxu1 }
 0x541   :  { %v2928_v44 = vpop.f32.mrf.mxu0  ;;  %v2824_v53 = vadd.f32 %v2817_v43, %v2711_v51 }
 0x542   :  { %v4085_v34 = vpop.f32.mrf.mxu1 }
 0x543   :  { %v4105_v45 = vpop.f32.mrf.mxu0  ;;  %v2935_v56 = vadd.f32 %v2928_v44, %v2824_v53 }
 0x544   :  { %v2820_v46 = vpop.f32.mrf.mxu1 }
 0x545   :  { %v2931_v47 = vpop.f32.mrf.mxu0  ;;  %v2825_v58 = vadd.f32 %v2820_v46, %v2712_v54 }
 0x546   :  { %v4086_v48 = vpop.f32.mrf.mxu1 }
 0x547   :  { %v4106_v49 = vpop.f32.mrf.mxu0  ;;  %v2936_v57 = vadd.f32 %v2931_v47, %v2825_v58 }
 0x560   :  { %v3041_v60 = vpop.f32.mrf.mxu1 }
 0x561   :  { %v3048_v62 = vadd.f32 %v3041_v60, %v2935_v56 }
 0x562   :  { %v4125_v55 = vpop.f32.mrf.mxu1 }
 0x563   :  { %v3055_v63 = vadd.f32 %v3412_v61, %v3048_v62 }
 0x564   :  { %v3044_v0 = vpop.f32.mrf.mxu1 }
 0x565   :  { %v3049_v2 = vadd.f32 %v3044_v0, %v2936_v57  ;;  %v3057_v4 = vmul.f32 0.1, %v3055_v63 }
 0x566   :  { %v4126_v3 = vpop.f32.mrf.mxu1 }
 0x567   :  { %v3056_v5 = vadd.f32 %v3412_v61, %v3049_v2  ;;  %v3059_v9 = vmax.f32 %v3055_v63, %v3057_v4 }
 0x569   :  { %v3058_v6 = vmul.f32 0.1, %v3056_v5 }
 0x56b   :  { %v3060_v10 = vmax.f32 %v3056_v5, %v3058_v6 }
 0x56d   :  { %v3061_v11 = vpack.c.bf16 %v3060_v10, %v3059_v9 }
 0x56f   :  { %4144 = vmatmul.mubr.bf16.vlgmr.msra.gmra.mxu0 %v3061_v11 }
 0x62f   :  { %v3166_v8 = vpop.f32.mrf.mxu0 }
 0x630   :  { %v3167_v35 = vadd.f32 %v3413_v7, %v3166_v8 }
 0x631   :  { %v4145_v13 = vpop.f32.mrf.mxu0 }
 0x632   :  { %3173 = vst [vmem:[%s4906_s3] sm:$0xff] %v3167_v35 }
 0x633   :  { %v3169_v15 = vpop.f32.mrf.mxu0 }
 0x634   :  { %v3170_v16 = vadd.f32 %v3413_v7, %v3169_v15 }
 0x635   :  { %v4146_v17 = vpop.f32.mrf.mxu0 }
 0x636   :  { %3174 = vst [vmem:[%s4906_s3 + $0x8] sm:$0xff] %v3170_v16 }
 0x637   :  { %3179 = vsyncpa [#allocation6], 1 }

</bundles_post_ra>
